<compile_context>
chip_gen: v6e
topology: v6e:2x2x1
jax: 0.10.0
libtpu: 0.0.40
codegen_flags: <defaults>
</compile_context>

<pallas_src>
import functools

import jax
import jax.numpy as jnp
from jax.experimental import pallas as pl
from jax.experimental.pallas import tpu as pltpu

BN_EPS = 1e-5
LANE = 128


def _round_up(x, m):
    return (x + m - 1) // m * m


def _pad_cols(a, target_cols, value=0.0):
    pad = target_cols - a.shape[-1]
    if pad <= 0:
        return a
    cfg = [(0, 0)] * (a.ndim - 1) + [(0, pad)]
    return jnp.pad(a, cfg, constant_values=value)


def _pad_matrix(w, rows, cols):
    return jnp.pad(w, ((0, rows - w.shape[0]), (0, cols - w.shape[1])))


def _vmem_budget_bytes():
    """Per-generation scoped-VMEM budget: ~3/4 of physical VMEM, capped at 96 MiB.
    v5e/v6e (128 MiB) -> 96 MiB, v7x (64 MiB/TC) -> 48 MiB. Falls back to 48 MiB."""
    try:
        cap = int(pltpu.get_tpu_info().vmem_capacity_bytes)
    except Exception:
        cap = 64 * 1024 * 1024
    return min(cap * 3 // 4, 96 * 1024 * 1024)


# ---------------------------------------------------------------------------
# Fused kernel
# ---------------------------------------------------------------------------
def _bn_scale_shift(y, gamma, beta, *, two_pass):
    """Training-mode BatchNorm1d stats on an (N, D) f32 tile, folded into
    per-feature (1, D) scale/shift rows.  Apply as y*scale + shift."""
    inv_n = jnp.float32(1.0 / y.shape[0])
    mean = jnp.sum(y, axis=0, keepdims=True) * inv_n
    if two_pass:
        d = y - mean
        var = jnp.sum(d * d, axis=0, keepdims=True) * inv_n
    else:
        sq = jnp.sum(y * y, axis=0, keepdims=True) * inv_n
        var = jnp.maximum(sq - mean * mean, 0.0)
    scale = gamma * jax.lax.rsqrt(var + BN_EPS)
    shift = beta - mean * scale
    return scale, shift


def _make_fused_kernel(normalize_input, has_relu_bn, matmul_dtype):
    """Kernel over refs laid out as:
       x, [in_gamma, in_beta], then per layer: w, b, [gamma, beta], out."""
    n_layers = len(has_relu_bn)

    def kernel(*refs):
        out_ref = refs[-1]
        it = iter(refs[:-1])

        x = next(it)[...].astype(jnp.float32)  # (N, d_in) — unpadded lanes.
        if normalize_input:
            g = next(it)[...].astype(jnp.float32)
            b = next(it)[...].astype(jnp.float32)
            # Two-pass variance: raw inputs may have |mean| >> std.
            scale, shift = _bn_scale_shift(x, g, b, two_pass=True)
            x = x * scale + shift

        for li in range(n_layers):
            w = next(it)[...]
            bias = next(it)[...].astype(jnp.float32)
            y = jnp.dot(
                x.astype(matmul_dtype),
                w.astype(matmul_dtype),
                preferred_element_type=jnp.float32,
            ) + bias
            if has_relu_bn[li]:
                g = next(it)[...].astype(jnp.float32)
                beta = next(it)[...].astype(jnp.float32)
                y = jnp.maximum(y, 0.0)
                scale, shift = _bn_scale_shift(y, g, beta, two_pass=False)
                y = y * scale + shift
            x = y

        out_ref[...] = x.astype(out_ref.dtype)

    return kernel


# ---------------------------------------------------------------------------
# Parameter setup (mirrors DNN_block.__init__)
# ---------------------------------------------------------------------------
def init_dnn_block(key, input_dim, output_dim, dimensions, normalize_input):
    params = {"normalize_input": normalize_input, "layers": []}
    if normalize_input:
        key, k1, k2 = jax.random.split(key, 3)
        params["input_bn"] = {
            "gamma": 1.0 + 0.1 * jax.random.normal(k1, (1, input_dim), jnp.float32),
            "beta": 0.1 * jax.random.normal(k2, (1, input_dim), jnp.float32),
        }
    else:
        params["input_bn"] = None

    dims_out = dimensions[1:]
    for iD, (dim_in, dim_out) in enumerate(zip(dimensions, dims_out)):
        key, kw, kb, kg, kbeta = jax.random.split(key, 5)
        scale = 1.0 / jnp.sqrt(float(dim_in))
        layer = {
            "w": scale * jax.random.normal(kw, (dim_in, dim_out), jnp.float32),
            "b": scale * jax.random.normal(kb, (1, dim_out), jnp.float32),
        }
        has_relu_bn = (dim_out != output_dim) or (iD != len(dims_out) - 1)
        layer["has_relu_bn"] = has_relu_bn
        if has_relu_bn:
            layer["gamma"] = 1.0 + 0.1 * jax.random.normal(kg, (1, dim_out), jnp.float32)
            layer["beta"] = 0.1 * jax.random.normal(kbeta, (1, dim_out), jnp.float32)
        params["layers"].append(layer)
    return params


def prepare_fused_params(params, use_bf16=True):
    """Pads layer-output feature dims to multiples of 128 lanes and (by default)
    pre-casts matmul weights to bf16.  The input feature dim and the input-BN
    gamma/beta stay UNPADDED (x is fed to the kernel as-is).
    Padded weight columns / bias / beta are zero and padded gamma is one, so
    padded activation columns remain exactly zero through ReLU/BN."""
    normalize_input = params["input_bn"] is not None
    matmul_dtype = jnp.bfloat16 if use_bf16 else jnp.float32

    flat, has_relu_bn, pad_dims = [], [], []

    if normalize_input:
        bn = params["input_bn"]
        flat.append(bn["gamma"])  # (1, d_in) unpadded
        flat.append(bn["beta"])   # (1, d_in) unpadded

    prev_pad = params["layers"][0]["w"].shape[0]  # first K stays unpadded (= d_in)
    for layer in params["layers"]:
        _, d_out = layer["w"].shape
        d_out_pad = _round_up(d_out, LANE)
        pad_dims.append(d_out_pad)
        flat.append(_pad_matrix(layer["w"], prev_pad, d_out_pad).astype(matmul_dtype))
        flat.append(_pad_cols(layer["b"], d_out_pad, 0.0))
        has_relu_bn.append(bool(layer["has_relu_bn"]))
        if layer["has_relu_bn"]:
            flat.append(_pad_cols(layer["gamma"], d_out_pad, 1.0))
            flat.append(_pad_cols(layer["beta"], d_out_pad, 0.0))
        prev_pad = d_out_pad

    meta = dict(
        normalize_input=normalize_input,
        has_relu_bn=tuple(has_relu_bn),
        matmul_dtype=matmul_dtype,
        d_in=params["layers"][0]["w"].shape[0],
        d_out=params["layers"][-1]["w"].shape[1],
        d_out_pad=prev_pad,
        pad_dims=tuple(pad_dims),
    )
    return [jax.device_put(a) for a in flat], meta


def _assert_fits_vmem(n, flat, meta, budget):
    param_bytes = sum(int(a.size) * a.dtype.itemsize for a in flat)
    max_d = max(meta["pad_dims"])
    # unpadded input + ~6 activation-sized f32 buffers (live act, bf16 cast
    # copy, matmul result, y*y temp, output, slack) + 2 MiB Mosaic scratch.
    act_bytes = n * meta["d_in"] * 4 + 6 * n * max_d * 4
    total = param_bytes + act_bytes + (2 << 20)
    if total > budget:
        raise ValueError(
            f"Fused DNN_block footprint ~{total} B exceeds VMEM budget {budget} B; "
            f"needs the tiled two-pass BN variant (see TODO)."
        )


# ---------------------------------------------------------------------------
# Fused forward (single pallas_call) + factory that hoists all host-side prep
# ---------------------------------------------------------------------------
def fused_forward(meta, x, *flat):
    n = x.shape[0]
    kernel = _make_fused_kernel(
        meta["normalize_input"], meta["has_relu_bn"], meta["matmul_dtype"]
    )
    vmem_spec = pl.BlockSpec(memory_space=pltpu.MemorySpace.VMEM)
    inputs = (x,) + tuple(flat)

    # TODO(synk): emit bf16 output (keep the lane-dense 128-wide block) when the
    #             downstream consumer accepts it; f32 kept here for exact checks.
    out_pad = pl.pallas_call(
        kernel,
        out_shape=jax.ShapeDtypeStruct((n, meta["d_out_pad"]), jnp.float32),
        in_specs=[vmem_spec] * len(inputs),
        out_specs=vmem_spec,
        compiler_params=pltpu.CompilerParams(
            vmem_limit_bytes=meta["vmem_budget"],
        ),
    )(*inputs)
    return out_pad[:, : meta["d_out"]]


def make_dnn_block_forward(params, use_bf16=True):
    """Builds the fused forward ONCE: pads/casts/uploads params, fixes the VMEM
    budget, and constructs a single jitted callable.  Repeated calls reuse the
    jit cache (no retrace) and the resident device params (no re-padding)."""
    flat, meta = prepare_fused_params(params, use_bf16=use_bf16)
    meta["vmem_budget"] = _vmem_budget_bytes()
    fused = jax.jit(functools.partial(fused_forward, meta))

    def forward(x):
        _assert_fits_vmem(x.shape[0], flat, meta, meta["vmem_budget"])
        return fused(x, *flat)

    return forward


# ---------------------------------------------------------------------------
# Pure-JAX reference (mirrors PyTorch training-mode forward) for checking
# ---------------------------------------------------------------------------
def dnn_block_reference(params, x):
    def bn(v, gamma, beta):
        m = jnp.mean(v, axis=0, keepdims=True)
        var = jnp.mean((v - m) ** 2, axis=0, keepdims=True)
        return (v - m) * jax.lax.rsqrt(var + BN_EPS) * gamma + beta

    if params["input_bn"] is not None:
        x = bn(x, params["input_bn"]["gamma"], params["input_bn"]["beta"])
    for layer in params["layers"]:
        x = x @ layer["w"] + layer["b"]
        if layer["has_relu_bn"]:
            x = jnp.maximum(x, 0.0)
            x = bn(x, layer["gamma"], layer["beta"])
    return x


if __name__ == "__main__":
    # Shapes consistent with the module:
    #   input_dim=16, dimensions=(16, 32, 24, 8), output_dim=8, normalize_input=True
    #   -> input BN, Linear(16,32)+ReLU+BN, Linear(32,24)+ReLU+BN, Linear(24,8)
    batch = 256          # full-height MXU row tile
    input_dim = 16
    output_dim = 8
    dimensions = (16, 32, 24, 8)

    key = jax.random.PRNGKey(0)
    key, kx = jax.random.split(key)
    x = jax.random.normal(kx, (batch, input_dim), jnp.float32)

    params = init_dnn_block(key, input_dim, output_dim, dimensions,
                            normalize_input=True)
    ref = dnn_block_reference(params, x)

    # Default bf16-operand / f32-accumulate path (MXU-native on v5e/v6e/v7x).
    # Deliberate accuracy/speed trade: matmul inputs are bf16 -> loose tolerance.
    fwd_bf16 = make_dnn_block_forward(params, use_bf16=True)
    out_bf16 = jax.block_until_ready(fwd_bf16(x))
    out_bf16 = jax.block_until_ready(fwd_bf16(x))   # second call: jit-cache hit
    assert out_bf16.shape == (batch, output_dim), out_bf16.shape
    assert jnp.allclose(out_bf16, ref, atol=1e-1, rtol=1e-1), "bf16 mismatch vs reference"

    # Exact f32 matmul path (semantics of the PyTorch module).
    fwd_f32 = make_dnn_block_forward(params, use_bf16=False)
    out_f32 = jax.block_until_ready(fwd_f32(x))
    assert out_f32.shape == (batch, output_dim), out_f32.shape
    assert jnp.allclose(out_f32, ref, atol=1e-4, rtol=1e-4), "f32 mismatch vs reference"

    print("KERNEL_OK")
</pallas_src>

<mosaic_0001>
module attributes {stable_mosaic.version = 11 : i64} {
  func.func @kernel(%arg0: memref<256x16xf32, #tpu.memory_space<vmem>>, %arg1: memref<1x16xf32, #tpu.memory_space<vmem>>, %arg2: memref<1x16xf32, #tpu.memory_space<vmem>>, %arg3: memref<16x128xbf16, #tpu.memory_space<vmem>>, %arg4: memref<1x128xf32, #tpu.memory_space<vmem>>, %arg5: memref<1x128xf32, #tpu.memory_space<vmem>>, %arg6: memref<1x128xf32, #tpu.memory_space<vmem>>, %arg7: memref<128x128xbf16, #tpu.memory_space<vmem>>, %arg8: memref<1x128xf32, #tpu.memory_space<vmem>>, %arg9: memref<1x128xf32, #tpu.memory_space<vmem>>, %arg10: memref<1x128xf32, #tpu.memory_space<vmem>>, %arg11: memref<128x128xbf16, #tpu.memory_space<vmem>>, %arg12: memref<1x128xf32, #tpu.memory_space<vmem>>, %arg13: memref<256x128xf32, #tpu.memory_space<vmem>>) attributes {dimension_semantics = [], scalar_prefetch = 0 : i64, scratch_operands = 0 : i64, tpu.core_type = #tpu.core_type<tc>} {
    %c0 = arith.constant 0 : index
    %c0_0 = arith.constant 0 : index
    %0 = vector.load %arg0[%c0, %c0_0] : memref<256x16xf32, #tpu.memory_space<vmem>>, vector<256x16xf32>
    %c0_1 = arith.constant 0 : index
    %c0_2 = arith.constant 0 : index
    %1 = vector.load %arg1[%c0_1, %c0_2] : memref<1x16xf32, #tpu.memory_space<vmem>>, vector<1x16xf32>
    %c0_3 = arith.constant 0 : index
    %c0_4 = arith.constant 0 : index
    %2 = vector.load %arg2[%c0_3, %c0_4] : memref<1x16xf32, #tpu.memory_space<vmem>>, vector<1x16xf32>
    %cst = arith.constant dense<0.000000e+00> : vector<16xf32>
    %3 = vector.multi_reduction <add>, %0, %cst [0] : vector<256x16xf32> to vector<16xf32>
    %4 = vector.shape_cast %3 : vector<16xf32> to vector<1x16xf32>
    %cst_5 = arith.constant 3.906250e-03 : f32
    %5 = vector.broadcast %cst_5 : f32 to vector<1x16xf32>
    %6 = arith.mulf %4, %5 : vector<1x16xf32>
    %7 = vector.broadcast %6 : vector<1x16xf32> to vector<256x16xf32>
    %8 = arith.subf %0, %7 : vector<256x16xf32>
    %9 = arith.mulf %8, %8 : vector<256x16xf32>
    %cst_6 = arith.constant dense<0.000000e+00> : vector<16xf32>
    %10 = vector.multi_reduction <add>, %9, %cst_6 [0] : vector<256x16xf32> to vector<16xf32>
    %11 = vector.shape_cast %10 : vector<16xf32> to vector<1x16xf32>
    %cst_7 = arith.constant 3.906250e-03 : f32
    %12 = vector.broadcast %cst_7 : f32 to vector<1x16xf32>
    %13 = arith.mulf %11, %12 : vector<1x16xf32>
    %cst_8 = arith.constant 9.99999974E-6 : f32
    %14 = vector.broadcast %cst_8 : f32 to vector<1x16xf32>
    %15 = arith.addf %13, %14 : vector<1x16xf32>
    %16 = math.rsqrt %15 : vector<1x16xf32>
    %17 = arith.mulf %1, %16 : vector<1x16xf32>
    %18 = arith.mulf %6, %17 : vector<1x16xf32>
    %19 = arith.subf %2, %18 : vector<1x16xf32>
    %20 = vector.broadcast %17 : vector<1x16xf32> to vector<256x16xf32>
    %21 = arith.mulf %0, %20 : vector<256x16xf32>
    %22 = vector.broadcast %19 : vector<1x16xf32> to vector<256x16xf32>
    %23 = arith.addf %21, %22 : vector<256x16xf32>
    %c0_9 = arith.constant 0 : index
    %c0_10 = arith.constant 0 : index
    %24 = vector.load %arg3[%c0_9, %c0_10] : memref<16x128xbf16, #tpu.memory_space<vmem>>, vector<16x128xbf16>
    %c0_11 = arith.constant 0 : index
    %c0_12 = arith.constant 0 : index
    %25 = vector.load %arg4[%c0_11, %c0_12] : memref<1x128xf32, #tpu.memory_space<vmem>>, vector<1x128xf32>
    %26 = arith.truncf %23 : vector<256x16xf32> to vector<256x16xbf16>
    %cst_13 = arith.constant dense<0.000000e+00> : vector<256x128xf32>
    %27 = tpu.matmul %26, %24, %cst_13 {dimension_numbers = #tpu.dot_dimension_numbers<[1], [0], [0], [1], [0, 0, 1, 1], [], []>} : vector<256x16xbf16>, vector<16x128xbf16>, vector<256x128xf32> -> vector<256x128xf32>
    %28 = vector.broadcast %25 : vector<1x128xf32> to vector<256x128xf32>
    %29 = arith.addf %27, %28 : vector<256x128xf32>
    %c0_14 = arith.constant 0 : index
    %c0_15 = arith.constant 0 : index
    %30 = vector.load %arg5[%c0_14, %c0_15] : memref<1x128xf32, #tpu.memory_space<vmem>>, vector<1x128xf32>
    %c0_16 = arith.constant 0 : index
    %c0_17 = arith.constant 0 : index
    %31 = vector.load %arg6[%c0_16, %c0_17] : memref<1x128xf32, #tpu.memory_space<vmem>>, vector<1x128xf32>
    %cst_18 = arith.constant 0.000000e+00 : f32
    %32 = vector.broadcast %cst_18 : f32 to vector<256x128xf32>
    %33 = arith.maximumf %29, %32 : vector<256x128xf32>
    %cst_19 = arith.constant dense<0.000000e+00> : vector<128xf32>
    %34 = vector.multi_reduction <add>, %33, %cst_19 [0] : vector<256x128xf32> to vector<128xf32>
    %35 = vector.shape_cast %34 : vector<128xf32> to vector<1x128xf32>
    %cst_20 = arith.constant 3.906250e-03 : f32
    %36 = vector.broadcast %cst_20 : f32 to vector<1x128xf32>
    %37 = arith.mulf %35, %36 : vector<1x128xf32>
    %38 = arith.mulf %33, %33 : vector<256x128xf32>
    %cst_21 = arith.constant dense<0.000000e+00> : vector<128xf32>
    %39 = vector.multi_reduction <add>, %38, %cst_21 [0] : vector<256x128xf32> to vector<128xf32>
    %40 = vector.shape_cast %39 : vector<128xf32> to vector<1x128xf32>
    %cst_22 = arith.constant 3.906250e-03 : f32
    %41 = vector.broadcast %cst_22 : f32 to vector<1x128xf32>
    %42 = arith.mulf %40, %41 : vector<1x128xf32>
    %43 = arith.mulf %37, %37 : vector<1x128xf32>
    %44 = arith.subf %42, %43 : vector<1x128xf32>
    %cst_23 = arith.constant 0.000000e+00 : f32
    %45 = vector.broadcast %cst_23 : f32 to vector<1x128xf32>
    %46 = arith.maximumf %44, %45 : vector<1x128xf32>
    %cst_24 = arith.constant 9.99999974E-6 : f32
    %47 = vector.broadcast %cst_24 : f32 to vector<1x128xf32>
    %48 = arith.addf %46, %47 : vector<1x128xf32>
    %49 = math.rsqrt %48 : vector<1x128xf32>
    %50 = arith.mulf %30, %49 : vector<1x128xf32>
    %51 = arith.mulf %37, %50 : vector<1x128xf32>
    %52 = arith.subf %31, %51 : vector<1x128xf32>
    %53 = vector.broadcast %50 : vector<1x128xf32> to vector<256x128xf32>
    %54 = arith.mulf %33, %53 : vector<256x128xf32>
    %55 = vector.broadcast %52 : vector<1x128xf32> to vector<256x128xf32>
    %56 = arith.addf %54, %55 : vector<256x128xf32>
    %c0_25 = arith.constant 0 : index
    %c0_26 = arith.constant 0 : index
    %57 = vector.load %arg7[%c0_25, %c0_26] : memref<128x128xbf16, #tpu.memory_space<vmem>>, vector<128x128xbf16>
    %c0_27 = arith.constant 0 : index
    %c0_28 = arith.constant 0 : index
    %58 = vector.load %arg8[%c0_27, %c0_28] : memref<1x128xf32, #tpu.memory_space<vmem>>, vector<1x128xf32>
    %59 = arith.truncf %56 : vector<256x128xf32> to vector<256x128xbf16>
    %cst_29 = arith.constant dense<0.000000e+00> : vector<256x128xf32>
    %60 = tpu.matmul %59, %57, %cst_29 {dimension_numbers = #tpu.dot_dimension_numbers<[1], [0], [0], [1], [0, 0, 1, 1], [], []>} : vector<256x128xbf16>, vector<128x128xbf16>, vector<256x128xf32> -> vector<256x128xf32>
    %61 = vector.broadcast %58 : vector<1x128xf32> to vector<256x128xf32>
    %62 = arith.addf %60, %61 : vector<256x128xf32>
    %c0_30 = arith.constant 0 : index
    %c0_31 = arith.constant 0 : index
    %63 = vector.load %arg9[%c0_30, %c0_31] : memref<1x128xf32, #tpu.memory_space<vmem>>, vector<1x128xf32>
    %c0_32 = arith.constant 0 : index
    %c0_33 = arith.constant 0 : index
    %64 = vector.load %arg10[%c0_32, %c0_33] : memref<1x128xf32, #tpu.memory_space<vmem>>, vector<1x128xf32>
    %cst_34 = arith.constant 0.000000e+00 : f32
    %65 = vector.broadcast %cst_34 : f32 to vector<256x128xf32>
    %66 = arith.maximumf %62, %65 : vector<256x128xf32>
    %cst_35 = arith.constant dense<0.000000e+00> : vector<128xf32>
    %67 = vector.multi_reduction <add>, %66, %cst_35 [0] : vector<256x128xf32> to vector<128xf32>
    %68 = vector.shape_cast %67 : vector<128xf32> to vector<1x128xf32>
    %cst_36 = arith.constant 3.906250e-03 : f32
    %69 = vector.broadcast %cst_36 : f32 to vector<1x128xf32>
    %70 = arith.mulf %68, %69 : vector<1x128xf32>
    %71 = arith.mulf %66, %66 : vector<256x128xf32>
    %cst_37 = arith.constant dense<0.000000e+00> : vector<128xf32>
    %72 = vector.multi_reduction <add>, %71, %cst_37 [0] : vector<256x128xf32> to vector<128xf32>
    %73 = vector.shape_cast %72 : vector<128xf32> to vector<1x128xf32>
    %cst_38 = arith.constant 3.906250e-03 : f32
    %74 = vector.broadcast %cst_38 : f32 to vector<1x128xf32>
    %75 = arith.mulf %73, %74 : vector<1x128xf32>
    %76 = arith.mulf %70, %70 : vector<1x128xf32>
    %77 = arith.subf %75, %76 : vector<1x128xf32>
    %cst_39 = arith.constant 0.000000e+00 : f32
    %78 = vector.broadcast %cst_39 : f32 to vector<1x128xf32>
    %79 = arith.maximumf %77, %78 : vector<1x128xf32>
    %cst_40 = arith.constant 9.99999974E-6 : f32
    %80 = vector.broadcast %cst_40 : f32 to vector<1x128xf32>
    %81 = arith.addf %79, %80 : vector<1x128xf32>
    %82 = math.rsqrt %81 : vector<1x128xf32>
    %83 = arith.mulf %63, %82 : vector<1x128xf32>
    %84 = arith.mulf %70, %83 : vector<1x128xf32>
    %85 = arith.subf %64, %84 : vector<1x128xf32>
    %86 = vector.broadcast %83 : vector<1x128xf32> to vector<256x128xf32>
    %87 = arith.mulf %66, %86 : vector<256x128xf32>
    %88 = vector.broadcast %85 : vector<1x128xf32> to vector<256x128xf32>
    %89 = arith.addf %87, %88 : vector<256x128xf32>
    %c0_41 = arith.constant 0 : index
    %c0_42 = arith.constant 0 : index
    %90 = vector.load %arg11[%c0_41, %c0_42] : memref<128x128xbf16, #tpu.memory_space<vmem>>, vector<128x128xbf16>
    %c0_43 = arith.constant 0 : index
    %c0_44 = arith.constant 0 : index
    %91 = vector.load %arg12[%c0_43, %c0_44] : memref<1x128xf32, #tpu.memory_space<vmem>>, vector<1x128xf32>
    %92 = arith.truncf %89 : vector<256x128xf32> to vector<256x128xbf16>
    %cst_45 = arith.constant dense<0.000000e+00> : vector<256x128xf32>
    %93 = tpu.matmul %92, %90, %cst_45 {dimension_numbers = #tpu.dot_dimension_numbers<[1], [0], [0], [1], [0, 0, 1, 1], [], []>} : vector<256x128xbf16>, vector<128x128xbf16>, vector<256x128xf32> -> vector<256x128xf32>
    %94 = vector.broadcast %91 : vector<1x128xf32> to vector<256x128xf32>
    %95 = arith.addf %93, %94 : vector<256x128xf32>
    %c0_46 = arith.constant 0 : index
    %c0_47 = arith.constant 0 : index
    %96 = vector.load %arg13[%c0_46, %c0_47] : memref<256x128xf32, #tpu.memory_space<vmem>>, vector<256x128xf32>
    tpu.vector_store %arg13[%c0_46, %c0_47], %95 {strides = array<i32>} : memref<256x128xf32, #tpu.memory_space<vmem>>, vector<256x128xf32>,
    return
  }
}

</mosaic_0001>

<bundles_post_ra>
// kernel: fused_forward.1
= control target key start
LH: loop header
LB: loop body
LE: loop exit
PB: predicated region body
PF: predicated region fallthrough
CT: control target
= control target key end

     0   :  { %vm79_vm0 = vcmask 130048   ;;  %s3191_s3 = inlined_call_operand.vmem [shape: bf16[16,128], index: 3, kind: input, shape index: {}]   ;;  %s3192_s0 = inlined_call_operand.vmem [shape: f32[256,16], index: 0, kind: input, shape index: {}]   ;;  %s3193_s1 = inlined_call_operand.vmem [shape: f32[1,16], index: 1, kind: input, shape index: {}]   ;;  %s3194_s2 = inlined_call_operand.vmem [shape: f32[1,16], index: 2, kind: input, shape index: {}]   ;;  %s3195_s7 = inlined_call_operand.vmem [shape: bf16[128,128], index: 7, kind: input, shape index: {}]   ;;  %s3196_s4 = inlined_call_operand.vmem [shape: f32[1,128], index: 4, kind: input, shape index: {}]   ;;  %s3197_s5 = inlined_call_operand.vmem [shape: f32[1,128], index: 5, kind: input, shape index: {}]   ;;  %s3198_s6 = inlined_call_operand.vmem [shape: f32[1,128], index: 6, kind: input, shape index: {}]   ;;  %s3199_s11 = inlined_call_operand.vmem [shape: bf16[128,128], index: 11, kind: input, shape index: {}]   ;;  %s3200_s8 = inlined_call_operand.vmem [shape: f32[1,128], index: 8, kind: input, shape index: {}]   ;;  %s3201_s9 = inlined_call_operand.vmem [shape: f32[1,128], index: 9, kind: input, shape index: {}]   ;;  %s3202_s10 = inlined_call_operand.vmem [shape: f32[1,128], index: 10, kind: input, shape index: {}]   ;;  %s3203_s12 = inlined_call_operand.vmem [shape: f32[1,128], index: 12, kind: input, shape index: {}]   ;;  %s3204_s13 = inlined_call_operand.vmem [shape: f32[256,128], index: 13, kind: output, shape index: {}]  }
   0x1   :  { %v1822_v0 = vld [vmem:[%s3191_s3] sm:$0xff]   ;;  %v1926_v2 = vld [vmem:[%s3192_s0 + $0x8] sm:$0xff]  ;;  %v1931_v3 = vld [vmem:[%s3192_s0 + $0x10] sm:$0xff] }
   0x2   :  { %v1921_v1 = vld [vmem:[%s3192_s0] sm:$0xff]  ;;  %1690 = vmatprep.subr.bf16.mxu0 %v1822_v0  ;;  %v1936_v4 = vld [vmem:[%s3192_s0 + $0x18] sm:$0xff]  ;;  %v81_v6 = vsel %vm79_vm0, %v1926_v2, 0.0  ;;  %v83_v7 = vsel %vm79_vm0, %v1931_v3, 0.0  ;;  %1820 = vmatprep.subr.bf16.mxu1 %v1822_v0  ;;  %v1954_v11 = vld [vmem:[%s3192_s0 + $0x28] sm:$0xff] }
   0x3   :  { %v80_v5 = vsel %vm79_vm0, %v1921_v1, 0.0  ;;  %1691 = vmatpush3.bf16.msra.mxu0 %v1822_v0  ;;  %v1947_v8 = vld [vmem:[%s3192_s0 + $0x20] sm:$0xff]  ;;  %1821 = vmatpush3.bf16.msra.mxu1 %v1822_v0  ;;  %v85_v10 = vsel %vm79_vm0, %v1936_v4, 0.0  ;;  %v1961_v14 = vld [vmem:[%s3192_s0 + $0x30] sm:$0xff]  ;;  %v89_v16 = vsel %vm79_vm0, %v1954_v11, 0.0  ;;  %v1968_v17 = vld [vmem:[%s3192_s0 + $0x38] sm:$0xff] }
   0x4   :  { %v82_v9 = vadd.f32 %v81_v6, %v80_v5  ;;  %v87_v13 = vsel %vm79_vm0, %v1947_v8, 0.0  ;;  %v91_v19 = vsel %vm79_vm0, %v1961_v14, 0.0  ;;  %v1975_v20 = vld [vmem:[%s3192_s0 + $0x40] sm:$0xff]  ;;  %v93_v22 = vsel %vm79_vm0, %v1968_v17, 0.0  ;;  %v1982_v23 = vld [vmem:[%s3192_s0 + $0x48] sm:$0xff]  ;;  %v1989_v26 = vld [vmem:[%s3192_s0 + $0x50] sm:$0xff] }
   0x5   :  { %v95_v25 = vsel %vm79_vm0, %v1975_v20, 0.0  ;;  %v97_v28 = vsel %vm79_vm0, %v1982_v23, 0.0  ;;  %v1996_v29 = vld [vmem:[%s3192_s0 + $0x58] sm:$0xff]  ;;  %v99_v31 = vsel %vm79_vm0, %v1989_v26, 0.0  ;;  %v2003_v32 = vld [vmem:[%s3192_s0 + $0x60] sm:$0xff]  ;;  %v2010_v35 = vld [vmem:[%s3192_s0 + $0x68] sm:$0xff] }
   0x6   :  { %v84_v12 = vadd.f32 %v83_v7, %v82_v9  ;;  %v101_v34 = vsel %vm79_vm0, %v1996_v29, 0.0  ;;  %v103_v37 = vsel %vm79_vm0, %v2003_v32, 0.0  ;;  %v2017_v38 = vld [vmem:[%s3192_s0 + $0x70] sm:$0xff]  ;;  %v105_v40 = vsel %vm79_vm0, %v2010_v35, 0.0  ;;  %v2024_v41 = vld [vmem:[%s3192_s0 + $0x78] sm:$0xff]  ;;  %v2031_v44 = vld [vmem:[%s3192_s0 + $0x80] sm:$0xff] }
   0x7   :  { %v107_v43 = vsel %vm79_vm0, %v2017_v38, 0.0  ;;  %v109_v46 = vsel %vm79_vm0, %v2024_v41, 0.0  ;;  %v2038_v47 = vld [vmem:[%s3192_s0 + $0x88] sm:$0xff]  ;;  %v111_v49 = vsel %vm79_vm0, %v2031_v44, 0.0  ;;  %v2045_v50 = vld [vmem:[%s3192_s0 + $0x90] sm:$0xff]  ;;  %v2052_v53 = vld [vmem:[%s3192_s0 + $0x98] sm:$0xff] }
   0x8   :  { %v86_v15 = vadd.f32 %v85_v10, %v84_v12  ;;  %v113_v52 = vsel %vm79_vm0, %v2038_v47, 0.0  ;;  %v115_v55 = vsel %vm79_vm0, %v2045_v50, 0.0  ;;  %v2059_v56 = vld [vmem:[%s3192_s0 + $0xa0] sm:$0xff]  ;;  %v117_v58 = vsel %vm79_vm0, %v2052_v53, 0.0  ;;  %v2066_v59 = vld [vmem:[%s3192_s0 + $0xa8] sm:$0xff]  ;;  %v2073_v62 = vld [vmem:[%s3192_s0 + $0xb0] sm:$0xff] }
   0x9   :  { %v119_v61 = vsel %vm79_vm0, %v2059_v56, 0.0  ;;  %v121_v0 = vsel %vm79_vm0, %v2066_v59, 0.0  ;;  %v2080_v5 = vld [vmem:[%s3192_s0 + $0xb8] sm:$0xff]  ;;  %v123_v7 = vsel %vm79_vm0, %v2073_v62, 0.0  ;;  %v2087_v9 = vld [vmem:[%s3192_s0 + $0xc0] sm:$0xff] }
   0xa   :  { %v88_v18 = vadd.f32 %v87_v13, %v86_v15  ;;  %v125_v12 = vsel %vm79_vm0, %v2080_v5, 0.0  ;;  %v2094_v13 = vld [vmem:[%s3192_s0 + $0xc8] sm:$0xff] }
   0xc   :  { %v90_v21 = vadd.f32 %v89_v16, %v88_v18  ;;  %v127_v16 = vsel %vm79_vm0, %v2087_v9, 0.0  ;;  %v2101_v18 = vld [vmem:[%s3192_s0 + $0xd0] sm:$0xff] }
   0xe   :  { %v92_v24 = vadd.f32 %v91_v19, %v90_v21  ;;  %v129_v21 = vsel %vm79_vm0, %v2094_v13, 0.0 }
  0x10   :  { %v94_v27 = vadd.f32 %v93_v22, %v92_v24  ;;  %v2108_v22 = vld [vmem:[%s3192_s0 + $0xd8] sm:$0xff] }
  0x12   :  { %v96_v30 = vadd.f32 %v95_v25, %v94_v27  ;;  %v131_v25 = vsel %vm79_vm0, %v2101_v18, 0.0  ;;  %v2115_v27 = vld [vmem:[%s3192_s0 + $0xe0] sm:$0xff] }
  0x14   :  { %v98_v33 = vadd.f32 %v97_v28, %v96_v30  ;;  %v133_v30 = vsel %vm79_vm0, %v2108_v22, 0.0 }
  0x16   :  { %v100_v36 = vadd.f32 %v99_v31, %v98_v33  ;;  %v2122_v31 = vld [vmem:[%s3192_s0 + $0xe8] sm:$0xff] }
  0x18   :  { %v102_v39 = vadd.f32 %v101_v34, %v100_v36  ;;  %v135_v34 = vsel %vm79_vm0, %v2115_v27, 0.0  ;;  %v2129_v36 = vld [vmem:[%s3192_s0 + $0xf0] sm:$0xff] }
  0x1a   :  { %v104_v42 = vadd.f32 %v103_v37, %v102_v39  ;;  %v137_v39 = vsel %vm79_vm0, %v2122_v31, 0.0 }
  0x1c   :  { %v106_v45 = vadd.f32 %v105_v40, %v104_v42  ;;  %v2136_v40 = vld [vmem:[%s3192_s0 + $0xf8] sm:$0xff] }
  0x1e   :  { %v108_v48 = vadd.f32 %v107_v43, %v106_v45  ;;  %v139_v43 = vsel %vm79_vm0, %v2129_v36, 0.0 }
  0x20   :  { %v110_v51 = vadd.f32 %v109_v46, %v108_v48  ;;  %v141_v46 = vsel %vm79_vm0, %v2136_v40, 0.0 }
  0x22   :  { %v112_v54 = vadd.f32 %v111_v49, %v110_v51 }
  0x24   :  { %v114_v57 = vadd.f32 %v113_v52, %v112_v54 }
  0x26   :  { %v116_v60 = vadd.f32 %v115_v55, %v114_v57 }
  0x28   :  { %v118_v63 = vadd.f32 %v117_v58, %v116_v60 }
  0x2a   :  { %v120_v6 = vadd.f32 %v119_v61, %v118_v63 }
  0x2c   :  { %v122_v10 = vadd.f32 %v121_v0, %v120_v6 }
  0x2e   :  { %v124_v15 = vadd.f32 %v123_v7, %v122_v10 }
  0x30   :  { %v126_v19 = vadd.f32 %v125_v12, %v124_v15 }
  0x32   :  { %v128_v24 = vadd.f32 %v127_v16, %v126_v19 }
  0x34   :  { %v130_v28 = vadd.f32 %v129_v21, %v128_v24 }
  0x36   :  { %v132_v33 = vadd.f32 %v131_v25, %v130_v28 }
  0x38   :  { %v134_v37 = vadd.f32 %v133_v30, %v132_v33 }
  0x3a   :  { %v136_v42 = vadd.f32 %v135_v34, %v134_v37 }
  0x3c   :  { %v138_v45 = vadd.f32 %v137_v39, %v136_v42 }
  0x3e   :  { %v140_v48 = vadd.f32 %v139_v43, %v138_v45 }
  0x40   :  { %v142_v49 = vadd.f32 %v141_v46, %v140_v48 }
  0x42   :  { %v143_v51 = vrot.slane %v142_v49, 4 }
  0x44   :  { %v144_v52 = vadd.f32 %v143_v51, %v142_v49 }
  0x46   :  { %v145_v54 = vrot.slane %v144_v52, 2 }
  0x48   :  { %v146_v55 = vadd.f32 %v145_v54, %v144_v52 }
  0x4a   :  { %v147_v57 = vrot.slane %v146_v55, 1 }
  0x4c   :  { %v148_v58 = vadd.f32 %v147_v57, %v146_v55 }
  0x4e   :  { %v2142_v60 = vmul.f32 0.00390625, %v148_v58 }
  0x50   :  { %v150_v61 = vsub.f32 %v1921_v1, %v2142_v60  ;;  %v151_v63 = vsub.f32 %v1926_v2, %v2142_v60  ;;  %v152_v0 = vsub.f32 %v1931_v3, %v2142_v60  ;;  %v153_v6 = vsub.f32 %v1936_v4, %v2142_v60 }
  0x51   :  { %v154_v7 = vsub.f32 %v1947_v8, %v2142_v60  ;;  %v155_v16 = vsub.f32 %v1954_v11, %v2142_v60  ;;  %v156_v21 = vsub.f32 %v1961_v14, %v2142_v60  ;;  %v157_v34 = vsub.f32 %v1968_v17, %v2142_v60 }
  0x52   :  { %v182_v10 = vmul.f32 %v150_v61, %v150_v61  ;;  %v183_v12 = vmul.f32 %v151_v63, %v151_v63  ;;  %v184_v15 = vmul.f32 %v152_v0, %v152_v0  ;;  %v185_v19 = vmul.f32 %v153_v6, %v153_v6 }
  0x53   :  { %v186_v24 = vmul.f32 %v154_v7, %v154_v7  ;;  %v187_v37 = vmul.f32 %v155_v16, %v155_v16  ;;  %v158_v43 = vsub.f32 %v1975_v20, %v2142_v60  ;;  %v188_v45 = vmul.f32 %v156_v21, %v156_v21 }
  0x54   :  { %v214_v25 = vsel %vm79_vm0, %v182_v10, 0.0  ;;  %v215_v28 = vsel %vm79_vm0, %v183_v12, 0.0  ;;  %v217_v30 = vsel %vm79_vm0, %v184_v15, 0.0  ;;  %v219_v39 = vsel %vm79_vm0, %v185_v19, 0.0 }
  0x55   :  { %v216_v33 = vadd.f32 %v215_v28, %v214_v25  ;;  %v221_v46 = vsel %vm79_vm0, %v186_v24, 0.0  ;;  %v159_v49 = vsub.f32 %v1982_v23, %v2142_v60  ;;  %v189_v51 = vmul.f32 %v157_v34, %v157_v34 }
  0x56   :  { %v223_v52 = vsel %vm79_vm0, %v187_v37, 0.0  ;;  %v160_v55 = vsub.f32 %v1989_v26, %v2142_v60  ;;  %v190_v57 = vmul.f32 %v158_v43, %v158_v43  ;;  %v225_v58 = vsel %vm79_vm0, %v188_v45, 0.0 }
  0x57   :  { %v218_v42 = vadd.f32 %v217_v30, %v216_v33  ;;  %v161_v63 = vsub.f32 %v1996_v29, %v2142_v60  ;;  %v191_v0 = vmul.f32 %v159_v49, %v159_v49  ;;  %v227_v6 = vsel %vm79_vm0, %v189_v51, 0.0 }
  0x58   :  { %v162_v10 = vsub.f32 %v2003_v32, %v2142_v60  ;;  %v192_v12 = vmul.f32 %v160_v55, %v160_v55  ;;  %v229_v15 = vsel %vm79_vm0, %v190_v57, 0.0  ;;  %v163_v19 = vsub.f32 %v2010_v35, %v2142_v60 }
  0x59   :  { %v220_v48 = vadd.f32 %v219_v39, %v218_v42  ;;  %v193_v21 = vmul.f32 %v161_v63, %v161_v63  ;;  %v231_v24 = vsel %vm79_vm0, %v191_v0, 0.0  ;;  %v164_v28 = vsub.f32 %v2017_v38, %v2142_v60 }
  0x5a   :  { %v194_v30 = vmul.f32 %v162_v10, %v162_v10  ;;  %v233_v33 = vsel %vm79_vm0, %v192_v12, 0.0  ;;  %v165_v37 = vsub.f32 %v2024_v41, %v2142_v60  ;;  %v195_v39 = vmul.f32 %v163_v19, %v163_v19 }
  0x5b   :  { %v222_v54 = vadd.f32 %v221_v46, %v220_v48  ;;  %v235_v42 = vsel %vm79_vm0, %v193_v21, 0.0  ;;  %v166_v45 = vsub.f32 %v2031_v44, %v2142_v60  ;;  %v196_v46 = vmul.f32 %v164_v28, %v164_v28 }
  0x5c   :  { %v237_v48 = vsel %vm79_vm0, %v194_v30, 0.0  ;;  %v167_v51 = vsub.f32 %v2038_v47, %v2142_v60  ;;  %v168_v57 = vsub.f32 %v2045_v50, %v2142_v60  ;;  %v169_v0 = vsub.f32 %v2052_v53, %v2142_v60 }
  0x5d   :  { %v224_v61 = vadd.f32 %v223_v52, %v222_v54  ;;  %v197_v52 = vmul.f32 %v165_v37, %v165_v37  ;;  %v239_v54 = vsel %vm79_vm0, %v195_v39, 0.0  ;;  %v170_v12 = vsub.f32 %v2059_v56, %v2142_v60 }
  0x5e   :  { %v171_v21 = vsub.f32 %v2066_v59, %v2142_v60  ;;  %v172_v30 = vsub.f32 %v2073_v62, %v2142_v60  ;;  %v173_v39 = vsub.f32 %v2080_v5, %v2142_v60 }
  0x5f   :  { %v226_v7 = vadd.f32 %v225_v58, %v224_v61  ;;  %v198_v58 = vmul.f32 %v166_v45, %v166_v45  ;;  %v241_v61 = vsel %vm79_vm0, %v196_v46, 0.0  ;;  %v174_v46 = vsub.f32 %v2087_v9, %v2142_v60 }
  0x61   :  { %v228_v16 = vadd.f32 %v227_v6, %v226_v7  ;;  %v199_v6 = vmul.f32 %v167_v51, %v167_v51  ;;  %v243_v7 = vsel %vm79_vm0, %v197_v52, 0.0  ;;  %v175_v52 = vsub.f32 %v2094_v13, %v2142_v60 }
  0x63   :  { %v230_v25 = vadd.f32 %v229_v15, %v228_v16  ;;  %v200_v15 = vmul.f32 %v168_v57, %v168_v57  ;;  %v245_v16 = vsel %vm79_vm0, %v198_v58, 0.0  ;;  %v176_v58 = vsub.f32 %v2101_v18, %v2142_v60 }
  0x65   :  { %v232_v34 = vadd.f32 %v231_v24, %v230_v25  ;;  %v201_v24 = vmul.f32 %v169_v0, %v169_v0  ;;  %v247_v25 = vsel %vm79_vm0, %v199_v6, 0.0  ;;  %v177_v6 = vsub.f32 %v2108_v22, %v2142_v60 }
  0x67   :  { %v234_v43 = vadd.f32 %v233_v33, %v232_v34  ;;  %v202_v33 = vmul.f32 %v170_v12, %v170_v12  ;;  %v249_v34 = vsel %vm79_vm0, %v200_v15, 0.0  ;;  %v178_v15 = vsub.f32 %v2115_v27, %v2142_v60 }
  0x69   :  { %v236_v49 = vadd.f32 %v235_v42, %v234_v43  ;;  %v203_v42 = vmul.f32 %v171_v21, %v171_v21  ;;  %v251_v43 = vsel %vm79_vm0, %v201_v24, 0.0  ;;  %v179_v24 = vsub.f32 %v2122_v31, %v2142_v60 }
  0x6b   :  { %v238_v55 = vadd.f32 %v237_v48, %v236_v49  ;;  %v204_v48 = vmul.f32 %v172_v30, %v172_v30  ;;  %v253_v49 = vsel %vm79_vm0, %v202_v33, 0.0  ;;  %v180_v33 = vsub.f32 %v2129_v36, %v2142_v60 }
  0x6d   :  { %v240_v63 = vadd.f32 %v239_v54, %v238_v55  ;;  %v205_v54 = vmul.f32 %v173_v39, %v173_v39  ;;  %v255_v55 = vsel %vm79_vm0, %v203_v42, 0.0  ;;  %v181_v42 = vsub.f32 %v2136_v40, %v2142_v60 }
  0x6f   :  { %v242_v10 = vadd.f32 %v241_v61, %v240_v63  ;;  %v206_v61 = vmul.f32 %v174_v46, %v174_v46  ;;  %v257_v63 = vsel %vm79_vm0, %v204_v48, 0.0  ;;  %v212_v48 = vmul.f32 %v180_v33, %v180_v33 }
  0x71   :  { %v244_v19 = vadd.f32 %v243_v7, %v242_v10  ;;  %v207_v7 = vmul.f32 %v175_v52, %v175_v52  ;;  %v259_v10 = vsel %vm79_vm0, %v205_v54, 0.0  ;;  %v213_v52 = vmul.f32 %v181_v42, %v181_v42 }
  0x73   :  { %v246_v28 = vadd.f32 %v245_v16, %v244_v19  ;;  %v208_v16 = vmul.f32 %v176_v58, %v176_v58  ;;  %v261_v19 = vsel %vm79_vm0, %v206_v61, 0.0  ;;  %v275_v61 = vsel %vm79_vm0, %v213_v52, 0.0 }
  0x75   :  { %v248_v37 = vadd.f32 %v247_v25, %v246_v28  ;;  %v209_v25 = vmul.f32 %v177_v6, %v177_v6  ;;  %v263_v28 = vsel %vm79_vm0, %v207_v7, 0.0 }
  0x77   :  { %v250_v45 = vadd.f32 %v249_v34, %v248_v37  ;;  %v210_v34 = vmul.f32 %v178_v15, %v178_v15  ;;  %v265_v37 = vsel %vm79_vm0, %v208_v16, 0.0 }
  0x79   :  { %v252_v51 = vadd.f32 %v251_v43, %v250_v45  ;;  %v211_v43 = vmul.f32 %v179_v24, %v179_v24  ;;  %v267_v45 = vsel %vm79_vm0, %v209_v25, 0.0  ;;  %v290_v24 = vlaneseq }
  0x7b   :  { %v254_v57 = vadd.f32 %v253_v49, %v252_v51  ;;  %v269_v49 = vsel %vm79_vm0, %v210_v34, 0.0  ;;  %v271_v54 = vsel %vm79_vm0, %v211_v43, 0.0  ;;  %v291_v25 = vshrl.u32 %v290_v24, 7 }
  0x7d   :  { %v256_v0 = vadd.f32 %v255_v55, %v254_v57  ;;  %v273_v57 = vsel %vm79_vm0, %v212_v48, 0.0 }
  0x7f   :  { %v258_v12 = vadd.f32 %v257_v63, %v256_v0 }
  0x81   :  { %v260_v21 = vadd.f32 %v259_v10, %v258_v12 }
  0x83   :  { %v262_v30 = vadd.f32 %v261_v19, %v260_v21 }
  0x85   :  { %v264_v39 = vadd.f32 %v263_v28, %v262_v30  ;;  %v77_v28 = vld [vmem:[%s3193_s1] sm:$0x1]  ;;  %v2243_v30 = vsub.s32 0, %v291_v25 }
  0x87   :  { %v266_v46 = vadd.f32 %v265_v37, %v264_v39  ;;  %v78_v37 = vld [vmem:[%s3194_s2] sm:$0x1] }
  0x89   :  { %v268_v51 = vadd.f32 %v267_v45, %v266_v46 }
  0x8b   :  { %v270_v55 = vadd.f32 %v269_v49, %v268_v51 }
  0x8d   :  { %v272_v58 = vadd.f32 %v271_v54, %v270_v55 }
  0x8f   :  { %v274_v63 = vadd.f32 %v273_v57, %v272_v58 }
  0x91   :  { %v276_v0 = vadd.f32 %v275_v61, %v274_v63 }
  0x93   :  { %v277_v6 = vrot.slane %v276_v0, 4 }
  0x95   :  { %v278_v7 = vadd.f32 %v277_v6, %v276_v0 }
  0x97   :  { %v279_v10 = vrot.slane %v278_v7, 2 }
  0x99   :  { %v280_v12 = vadd.f32 %v279_v10, %v278_v7 }
  0x9b   :  { %v281_v15 = vrot.slane %v280_v12, 1 }
  0x9d   :  { %v282_v16 = vadd.f32 %v281_v15, %v280_v12 }
  0x9f   :  { %v283_v19 = vmul.f32 0.00390625, %v282_v16 }
  0xa1   :  { %v284_v21 = vadd.f32 1e-05, %v283_v19 }
  0xa3   :  { %1839 = vrsqrt.f32 %v284_v21 }
  0xb0   :  { %v1840_v33 = vpop.eup %1839 }
  0xb1   :  { %v286_v34 = vmul.f32 %v1840_v33, %v77_v28 }
  0xb3   :  { %v287_v39 = vmul.f32 %v286_v34, %v2142_v60  ;;  %v2250_v42 = vrot.slane %v286_v34, %v2243_v30 }
  0xb5   :  { %v288_v43 = vsub.f32 %v78_v37, %v287_v39  ;;  %v295_v45 = vmul.f32 %v2250_v42, %v1921_v1  ;;  %v296_v46 = vmul.f32 %v2250_v42, %v1926_v2  ;;  %v297_v48 = vmul.f32 %v2250_v42, %v1931_v3 }
  0xb6   :  { %v298_v49 = vmul.f32 %v2250_v42, %v1936_v4  ;;  %v299_v51 = vmul.f32 %v2250_v42, %v1947_v8  ;;  %v300_v60 = vmul.f32 %v2250_v42, %v1954_v11  ;;  %v301_v8 = vmul.f32 %v2250_v42, %v1961_v14 }
  0xb7   :  { %v2265_v52 = vrot.slane %v288_v43, %v2243_v30  ;;  %v302_v11 = vmul.f32 %v2250_v42, %v1968_v17  ;;  %v303_v61 = vmul.f32 %v2250_v42, %v1975_v20  ;;  %v304_v63 = vmul.f32 %v2250_v42, %v1982_v23 }
  0xb8   :  { %v305_v6 = vmul.f32 %v2250_v42, %v1989_v26  ;;  %v306_v14 = vmul.f32 %v2250_v42, %v1996_v29  ;;  %v307_v17 = vmul.f32 %v2250_v42, %v2003_v32  ;;  %v311_v23 = vmul.f32 %v2250_v42, %v2031_v44 }
  0xb9   :  { %v333_v1 = vadd.f32 %v2265_v52, %v295_v45  ;;  %v334_v54 = vadd.f32 %v2265_v52, %v296_v46  ;;  %v335_v2 = vadd.f32 %v2265_v52, %v297_v48  ;;  %v336_v3 = vadd.f32 %v2265_v52, %v298_v49 }
  0xba   :  { %v337_v55 = vadd.f32 %v2265_v52, %v299_v51  ;;  %v338_v4 = vadd.f32 %v2265_v52, %v300_v60  ;;  %v339_v7 = vadd.f32 %v2265_v52, %v301_v8  ;;  %v340_v20 = vadd.f32 %v2265_v52, %v302_v11 }
  0xbb   :  { %v368_v57 = vpack.c.bf16 %v334_v54, %v333_v1  ;;  %v369_v58 = vpack.c.bf16 %v336_v3, %v335_v2  ;;  %v312_v10 = vmul.f32 %v2250_v42, %v2038_v47  ;;  %v341_v26 = vadd.f32 %v2265_v52, %v303_v61 }
  0xbc   :  { %v370_v0 = vpack.c.bf16 %v338_v4, %v337_v55  ;;  %v342_v29 = vadd.f32 %v2265_v52, %v304_v63  ;;  %v313_v32 = vmul.f32 %v2250_v42, %v2045_v50  ;;  %v314_v12 = vmul.f32 %v2250_v42, %v2052_v53 }
  0xbd   :  { %1692 = vmatprep.mubr.msk.bf16.mxu0 %vm79_vm0, %v368_v57  ;;  %v308_v15 = vmul.f32 %v2250_v42, %v2010_v35  ;;  %v349_v44 = vadd.f32 %v2265_v52, %v311_v23  ;;  %v350_v16 = vadd.f32 %v2265_v52, %v312_v10  ;;  %v315_v47 = vmul.f32 %v2250_v42, %v2059_v56  ;;  %v1830_v23 = vld [vmem:[%s3195_s7] sm:$0xff]  }
  0xbe   :  { %1693 = vmatmul.mubr.msk.bf16.vlgmr.msra.gmra.mxu0 %vm79_vm0, %v369_v58  ;;  %v351_v19 = vadd.f32 %v2265_v52, %v313_v32  ;;  %v352_v21 = vadd.f32 %v2265_v52, %v314_v12  ;;  %v316_v50 = vmul.f32 %v2250_v42, %v2066_v59  ;;  %v317_v53 = vmul.f32 %v2250_v42, %v2073_v62 }
  0xbf   :  { %1696 = vmatprep.mubr.msk.bf16.mxu0 %vm79_vm0, %v370_v0  ;;  %v371_v24 = vpack.c.bf16 %v340_v20, %v339_v7  ;;  %v376_v25 = vpack.c.bf16 %v350_v16, %v349_v44  ;;  %v353_v35 = vadd.f32 %v2265_v52, %v315_v47  ;;  %v318_v28 = vmul.f32 %v2250_v42, %v2080_v5  ;;  %v1828_v7 = vld [vmem:[%s3195_s7 + $0x10] sm:$0xff]   ;;  %v1829_v20 = vld [vmem:[%s3195_s7 + $0x8] sm:$0xff]  }
  0xc0   :  { %v372_v33 = vpack.c.bf16 %v342_v29, %v341_v26  ;;  %v377_v34 = vpack.c.bf16 %v352_v21, %v351_v19  ;;  %v354_v56 = vadd.f32 %v2265_v52, %v316_v50  ;;  %v319_v37 = vmul.f32 %v2250_v42, %v2087_v9  ;;  %v2394_v26 = vld [vmem:[%s3196_s4] ss:$0 sm:$0xff] }
  0xc1   :  { %v343_v39 = vadd.f32 %v2265_v52, %v305_v6  ;;  %1708 = vmatprep.mubr.msk.bf16.mxu1 %vm79_vm0, %v376_v25  ;;  %v320_v59 = vmul.f32 %v2250_v42, %v2094_v13  ;;  %v344_v62 = vadd.f32 %v2265_v52, %v306_v14  ;;  %v355_v5 = vadd.f32 %v2265_v52, %v317_v53 }
  0xc2   :  { %1709 = vmatmul.mubr.msk.bf16.vlgmr.msra.gmra.mxu1 %vm79_vm0, %v377_v34  ;;  %v378_v43 = vpack.c.bf16 %v354_v56, %v353_v35  ;;  %v356_v45 = vadd.f32 %v2265_v52, %v318_v28  ;;  %v357_v9 = vadd.f32 %v2265_v52, %v319_v37  ;;  %v345_v48 = vadd.f32 %v2265_v52, %v307_v17  ;;  %v1827_v17 = vld [vmem:[%s3195_s7 + $0x18] sm:$0xff]  }
  0xc3   :  { %v358_v46 = vadd.f32 %v2265_v52, %v320_v59  ;;  %v346_v13 = vadd.f32 %v2265_v52, %v308_v15  ;;  %v309_v49 = vmul.f32 %v2250_v42, %v2017_v38  ;;  %v373_v51 = vpack.c.bf16 %v344_v62, %v343_v39 }
  0xc4   :  { %1712 = vmatprep.mubr.msk.bf16.mxu1 %vm79_vm0, %v378_v43  ;;  %v379_v60 = vpack.c.bf16 %v356_v45, %v355_v5  ;;  %v321_v1 = vmul.f32 %v2250_v42, %v2101_v18  ;;  %v322_v54 = vmul.f32 %v2250_v42, %v2108_v22  ;;  %v310_v2 = vmul.f32 %v2250_v42, %v2024_v41 }
  0xc5   :  { %v380_v3 = vpack.c.bf16 %v358_v46, %v357_v9  ;;  %v323_v55 = vmul.f32 %v2250_v42, %v2115_v27  ;;  %v324_v4 = vmul.f32 %v2250_v42, %v2122_v31  ;;  %v374_v8 = vpack.c.bf16 %v346_v13, %v345_v48 }
  0xc6   :  { %1697 = vmatmul.mubr.msk.bf16.gmra.mxu0 %vm79_vm0, %v371_v24  ;;  %v347_v38 = vadd.f32 %v2265_v52, %v309_v49  ;;  %v359_v18 = vadd.f32 %v2265_v52, %v321_v1  ;;  %v360_v11 = vadd.f32 %v2265_v52, %v322_v54  ;;  %v348_v41 = vadd.f32 %v2265_v52, %v310_v2 }
  0xc7   :  { %1700 = vmatprep.mubr.msk.bf16.mxu0 %vm79_vm0, %v372_v33  ;;  %v361_v22 = vadd.f32 %v2265_v52, %v323_v55  ;;  %v362_v27 = vadd.f32 %v2265_v52, %v324_v4  ;;  %v325_v57 = vmul.f32 %v2250_v42, %v2129_v36  ;;  %v326_v58 = vmul.f32 %v2250_v42, %v2136_v40  ;;  %v1823_v36 = vld [vmem:[%s3195_s7 + $0x38] sm:$0xff]   ;;  %v1824_v40 = vld [vmem:[%s3195_s7 + $0x30] sm:$0xff]   ;;  %v1825_v42 = vld [vmem:[%s3195_s7 + $0x28] sm:$0xff]  }
  0xc8   :  { %v381_v31 = vpack.c.bf16 %v360_v11, %v359_v18  ;;  %v375_v61 = vpack.c.bf16 %v348_v41, %v347_v38  ;;  %1724 = vmatprep.subr.bf16.mxu1 %v1823_v36 }
  0xc9   :  { %v382_v63 = vpack.c.bf16 %v362_v27, %v361_v22  ;;  %v363_v0 = vadd.f32 %v2265_v52, %v325_v57  ;;  %v364_v6 = vadd.f32 %v2265_v52, %v326_v58  ;;  %1725 = vmatpush3.bf16.msra.mxu1 %v1823_v36  ;;  %v1826_v52 = vld [vmem:[%s3195_s7 + $0x20] sm:$0xff]  }
  0xca   :  { %1713 = vmatmul.mubr.msk.bf16.gmra.mxu1 %vm79_vm0, %v379_v60  ;;  %1726 = vmatprep.subr.bf16.mxu1 %v1824_v40 }
  0xcb   :  { %1716 = vmatprep.mubr.msk.bf16.mxu1 %vm79_vm0, %v380_v3  ;;  %v383_v14 = vpack.c.bf16 %v364_v6, %v363_v0 }
  0xcd   :  { %1727 = vmatpush3.bf16.msra.mxu1 %v1824_v40 }
  0xce   :  { %1701 = vmatmul.mubr.msk.bf16.gmra.mxu0 %vm79_vm0, %v373_v51  ;;  %1728 = vmatprep.subr.bf16.mxu1 %v1825_v42 }
  0xcf   :  { %1704 = vmatprep.mubr.msk.bf16.mxu0 %vm79_vm0, %v374_v8 }
  0xd1   :  { %1729 = vmatpush3.bf16.msra.mxu1 %v1825_v42 }
  0xd2   :  { %1717 = vmatmul.mubr.msk.bf16.gmra.mxu1 %vm79_vm0, %v381_v31  ;;  %1730 = vmatprep.subr.bf16.mxu1 %v1826_v52 }
  0xd3   :  { %1720 = vmatprep.mubr.msk.bf16.mxu1 %vm79_vm0, %v382_v63 }
  0xd5   :  { %1731 = vmatpush3.bf16.msra.mxu1 %v1826_v52 }
  0xd6   :  { %1705 = vmatmul.mubr.msk.bf16.gmra.mxu0 %vm79_vm0, %v375_v61  ;;  %1732 = vmatprep.subr.bf16.mxu1 %v1827_v17 }
  0xd9   :  { %1733 = vmatpush3.bf16.msra.mxu1 %v1827_v17 }
  0xda   :  { %1721 = vmatmul.mubr.msk.bf16.gmra.mxu1 %vm79_vm0, %v383_v14  ;;  %1734 = vmatprep.subr.bf16.mxu1 %v1828_v7 }
  0xdd   :  { %1735 = vmatpush3.bf16.msra.mxu1 %v1828_v7 }
  0xde   :  { %1736 = vmatprep.subr.bf16.mxu1 %v1829_v20 }
  0xe1   :  { %1737 = vmatpush3.bf16.msra.mxu1 %v1829_v20 }
  0xe2   :  { %1738 = vmatprep.subr.bf16.mxu1 %v1830_v23 }
  0xe5   :  { %1739 = vmatpush3.bf16.msra.mxu1 %v1830_v23 }
 0x17e   :  { %v1694_v10 = vpop.f32.mrf.mxu0 }
 0x17f   :  { %v487_v15 = vadd.f32 %v1694_v10, %v2394_v26 }
 0x180   :  { %v478_v29 = vpop.f32.mrf.mxu0 }
 0x181   :  { %v479_v32 = vadd.f32 %v2394_v26, %v478_v29  ;;  %v2404_v53 = vmax.f32 %v487_v15, 0.0 }
 0x182   :  { %v1695_v12 = vpop.f32.mrf.mxu0  ;;  %v2402_v21 = vpop.f32.mrf.mxu1 }
 0x183   :  { %v490_v44 = vadd.f32 %v1695_v12, %v2394_v26  ;;  %v2399_v47 = vmax.f32 %v479_v32, 0.0  ;;  %v679_v43 = vmul.f32 %v2404_v53, %v2404_v53 }
 0x184   :  { %v481_v16 = vpop.f32.mrf.mxu0  ;;  %v2408_v25 = vpop.f32.mrf.mxu1 }
 0x185   :  { %v482_v19 = vadd.f32 %v2394_v26, %v481_v16  ;;  %v2410_v35 = vmax.f32 %v490_v44, 0.0  ;;  %v677_v33 = vmul.f32 %v2399_v47, %v2399_v47 }
 0x186   :  { %v1698_v50 = vpop.f32.mrf.mxu0  ;;  %v2419_v39 = vpop.f32.mrf.mxu1 }
 0x187   :  { %v2406_v24 = vmax.f32 %v482_v19, 0.0  ;;  %v503_v59 = vadd.f32 %v1698_v50, %v2394_v26  ;;  %v680_v48 = vmul.f32 %v2410_v35, %v2410_v35 }
 0x188   :  { %v494_v28 = vpop.f32.mrf.mxu0  ;;  %v2427_v46 = vpop.f32.mrf.mxu1 }
 0x189   :  { %v639_v34 = vadd.f32 %v2406_v24, %v2399_v47  ;;  %v678_v56 = vmul.f32 %v2406_v24, %v2406_v24  ;;  %v495_v37 = vadd.f32 %v2394_v26, %v494_v28  ;;  %v2436_v2 = vmax.f32 %v503_v59, 0.0 }
 0x18a   :  { %v1699_v62 = vpop.f32.mrf.mxu0  ;;  %v2434_v54 = vpop.f32.mrf.mxu1 }
 0x18b   :  { %v640_v5 = vadd.f32 %v639_v34, %v2404_v53  ;;  %v709_v45 = vadd.f32 %v678_v56, %v677_v33  ;;  %v2425_v9 = vmax.f32 %v495_v37, 0.0  ;;  %v506_v60 = vadd.f32 %v1699_v62, %v2394_v26 }
 0x18c   :  { %v497_v13 = vpop.f32.mrf.mxu0  ;;  %v2443_v18 = vpop.f32.mrf.mxu1  ;;  %v683_v63 = vmul.f32 %v2436_v2, %v2436_v2 }
 0x18d   :  { %v710_v49 = vadd.f32 %v709_v45, %v679_v43  ;;  %v641_v51 = vadd.f32 %v640_v5, %v2410_v35  ;;  %v498_v1 = vadd.f32 %v2394_v26, %v497_v13  ;;  %v681_v4 = vmul.f32 %v2425_v9, %v2425_v9 }
 0x18e   :  { %v1702_v3 = vpop.f32.mrf.mxu0  ;;  %v2445_v22 = vmax.f32 %v506_v60, 0.0  ;;  %v2455_v14 = vpop.f32.mrf.mxu1 }
 0x18f   :  { %v642_v55 = vadd.f32 %v641_v51, %v2425_v9  ;;  %v711_v8 = vadd.f32 %v710_v49, %v680_v48  ;;  %v2441_v38 = vmax.f32 %v498_v1, 0.0  ;;  %v519_v57 = vadd.f32 %v1702_v3, %v2394_v26 }
 0x190   :  { %v510_v11 = vpop.f32.mrf.mxu0  ;;  %v684_v52 = vmul.f32 %v2445_v22, %v2445_v22  ;;  %v561_v44 = vpop.f32.mrf.mxu1 }
 0x191   :  { %v712_v41 = vadd.f32 %v711_v8, %v681_v4  ;;  %v643_v27 = vadd.f32 %v642_v55, %v2441_v38  ;;  %v682_v31 = vmul.f32 %v2441_v38, %v2441_v38  ;;  %v511_v58 = vadd.f32 %v2394_v26, %v510_v11 }
 0x192   :  { %v1703_v61 = vpop.f32.mrf.mxu0  ;;  %v2464_v23 = vmax.f32 %v519_v57, 0.0  ;;  %v2482_v5 = vpop.f32.mrf.mxu1 }
 0x193   :  { %v644_v0 = vadd.f32 %v643_v27, %v2436_v2  ;;  %v713_v6 = vadd.f32 %v712_v41, %v682_v31  ;;  %v2457_v36 = vmax.f32 %v511_v58, 0.0  ;;  %v522_v40 = vadd.f32 %v1703_v61, %v2394_v26 }
 0x194   :  { %v513_v42 = vpop.f32.mrf.mxu0  ;;  %v687_v37 = vmul.f32 %v2464_v23, %v2464_v23  ;;  %v574_v8 = vpop.f32.mrf.mxu1  ;;  %v543_v41 = vadd.f32 %v2394_v26, %v2408_v25 }
 0x195   :  { %v714_v17 = vadd.f32 %v713_v6, %v683_v63  ;;  %v645_v7 = vadd.f32 %v644_v0, %v2445_v22  ;;  %v514_v20 = vadd.f32 %v2394_v26, %v513_v42  ;;  %v685_v32 = vmul.f32 %v2457_v36, %v2457_v36 }
 0x196   :  { %v1706_v10 = vpop.f32.mrf.mxu0  ;;  %v2471_v16 = vmax.f32 %v522_v40, 0.0  ;;  %v546_v63 = vadd.f32 %v2394_v26, %v2427_v46  ;;  %v551_v0 = vadd.f32 %v2402_v21, %v2394_v26  ;;  %v1719_v6 = vpop.f32.mrf.mxu1  ;;  %v2510_v40 = vmax.f32 %v543_v41, 0.0 }
 0x197   :  { %v646_v29 = vadd.f32 %v645_v7, %v2457_v36  ;;  %v715_v12 = vadd.f32 %v714_v17, %v684_v52  ;;  %v2469_v15 = vmax.f32 %v514_v20, 0.0  ;;  %v535_v45 = vadd.f32 %v1706_v10, %v2394_v26 }
 0x198   :  { %v526_v19 = vpop.f32.mrf.mxu0  ;;  %v688_v13 = vmul.f32 %v2471_v16, %v2471_v16  ;;  %v554_v17 = vadd.f32 %v2419_v39, %v2394_v26  ;;  %v2517_v46 = vmax.f32 %v546_v63, 0.0  ;;  %v2520_v10 = vmax.f32 %v551_v0, 0.0 }
 0x199   :  { %v716_v50 = vadd.f32 %v715_v12, %v685_v32  ;;  %v647_v28 = vadd.f32 %v646_v29, %v2469_v15  ;;  %v686_v33 = vmul.f32 %v2469_v15, %v2469_v15  ;;  %v527_v34 = vadd.f32 %v2394_v26, %v526_v19  ;;  %v577_v29 = vpop.f32.mrf.mxu1 }
 0x19a   :  { %v1707_v56 = vpop.f32.mrf.mxu0  ;;  %v2493_v11 = vmax.f32 %v535_v45, 0.0  ;;  %v693_v32 = vmul.f32 %v2510_v40, %v2510_v40  ;;  %v559_v39 = vadd.f32 %v2394_v26, %v2443_v18  ;;  %v575_v41 = vadd.f32 %v2394_v26, %v574_v8 }
 0x19b   :  { %v648_v59 = vadd.f32 %v647_v28, %v2464_v23  ;;  %v717_v62 = vadd.f32 %v716_v50, %v686_v33  ;;  %v2480_v43 = vmax.f32 %v527_v34, 0.0  ;;  %v538_v60 = vadd.f32 %v1707_v56, %v2394_v26 }
 0x19c   :  { %v529_v48 = vpop.f32.mrf.mxu0  ;;  %v691_v25 = vmul.f32 %v2493_v11, %v2493_v11  ;;  %v2527_v50 = vmax.f32 %v554_v17, 0.0  ;;  %v694_v33 = vmul.f32 %v2517_v46, %v2517_v46  ;;  %v562_v56 = vadd.f32 %v2394_v26, %v561_v44 }
 0x19d   :  { %v718_v49 = vadd.f32 %v717_v62, %v687_v37  ;;  %v649_v51 = vadd.f32 %v648_v59, %v2471_v16  ;;  %v530_v1 = vadd.f32 %v2394_v26, %v529_v48  ;;  %v689_v55 = vmul.f32 %v2480_v43, %v2480_v43  ;;  %v1722_v59 = vpop.f32.mrf.mxu1 }
 0x19e   :  { %v2499_v57 = vmax.f32 %v538_v60, 0.0  ;;  %v567_v37 = vadd.f32 %v2434_v54, %v2394_v26  ;;  %v695_v62 = vmul.f32 %v2520_v10, %v2520_v10  ;;  %v2538_v48 = vmax.f32 %v559_v39, 0.0 }
 0x19f   :  { %v650_v3 = vadd.f32 %v649_v51, %v2480_v43  ;;  %v719_v4 = vadd.f32 %v718_v49, %v688_v13  ;;  %v2497_v27 = vmax.f32 %v530_v1, 0.0  ;;  %v570_v13 = vadd.f32 %v2455_v14, %v2394_v26  ;;  %v590_v1 = vpop.f32.mrf.mxu1 }
 0x1a0   :  { %v692_v7 = vmul.f32 %v2499_v57, %v2499_v57  ;;  %v696_v49 = vmul.f32 %v2527_v50, %v2527_v50  ;;  %v2545_v60 = vmax.f32 %v562_v56, 0.0  ;;  %v2547_v54 = vmax.f32 %v567_v37, 0.0 }
 0x1a1   :  { %v720_v31 = vadd.f32 %v719_v4, %v689_v55  ;;  %v651_v58 = vadd.f32 %v650_v3, %v2497_v27  ;;  %v690_v61 = vmul.f32 %v2497_v27, %v2497_v27  ;;  %v697_v55 = vmul.f32 %v2538_v48, %v2538_v48 }
 0x1a2   :  { %v2553_v14 = vmax.f32 %v570_v13, 0.0  ;;  %v578_v63 = vadd.f32 %v2394_v26, %v577_v29  ;;  %v583_v0 = vadd.f32 %v2482_v5, %v2394_v26  ;;  %v2564_v17 = vmax.f32 %v575_v41, 0.0 }
 0x1a3   :  { %v652_v42 = vadd.f32 %v651_v58, %v2493_v11  ;;  %v721_v52 = vadd.f32 %v720_v31, %v690_v61  ;;  %v698_v61 = vmul.f32 %v2545_v60, %v2545_v60 }
 0x1a4   :  { %v2572_v5 = vmax.f32 %v583_v0, 0.0  ;;  %v701_v39 = vmul.f32 %v2564_v17, %v2564_v17 }
 0x1a5   :  { %v722_v20 = vadd.f32 %v721_v52, %v691_v25  ;;  %v653_v21 = vadd.f32 %v652_v42, %v2499_v57  ;;  %v1723_v25 = vpop.f32.mrf.mxu1  ;;  %v699_v42 = vmul.f32 %v2547_v54, %v2547_v54 }
 0x1a7   :  { %v654_v12 = vadd.f32 %v653_v21, %v2510_v40  ;;  %v723_v19 = vadd.f32 %v722_v20, %v692_v7  ;;  %v586_v7 = vadd.f32 %v1719_v6, %v2394_v26  ;;  %v700_v20 = vmul.f32 %v2553_v14, %v2553_v14 }
 0x1a9   :  { %v655_v28 = vadd.f32 %v654_v12, %v2517_v46  ;;  %v724_v34 = vadd.f32 %v723_v19, %v693_v32  ;;  %v2570_v32 = vmax.f32 %v578_v63, 0.0  ;;  %v593_v12 = vpop.f32.mrf.mxu1  ;;  %v2578_v6 = vmax.f32 %v586_v7, 0.0 }
 0x1ab   :  { %v656_v45 = vadd.f32 %v655_v28, %v2520_v10  ;;  %v725_v18 = vadd.f32 %v724_v34, %v694_v33  ;;  %v591_v33 = vadd.f32 %v2394_v26, %v590_v1  ;;  %v702_v37 = vmul.f32 %v2570_v32, %v2570_v32 }
 0x1ad   :  { %v726_v51 = vadd.f32 %v725_v18, %v695_v62  ;;  %v657_v44 = vadd.f32 %v656_v45, %v2527_v50  ;;  %v594_v62 = vadd.f32 %v2394_v26, %v593_v12  ;;  %v703_v45 = vmul.f32 %v2572_v5, %v2572_v5 }
 0x1af   :  { %v658_v3 = vadd.f32 %v657_v44, %v2538_v48  ;;  %v727_v4 = vadd.f32 %v726_v51, %v696_v49  ;;  %v599_v49 = vadd.f32 %v1722_v59, %v2394_v26  ;;  %v2588_v51 = vmax.f32 %v591_v33, 0.0 }
 0x1b0   :  { %v704_v44 = vmul.f32 %v2578_v6, %v2578_v6 }
 0x1b1   :  { %v728_v31 = vadd.f32 %v727_v4, %v697_v55  ;;  %v659_v58 = vadd.f32 %v658_v3, %v2545_v60  ;;  %v602_v55 = vadd.f32 %v1723_v25, %v2394_v26  ;;  %v2594_v4 = vmax.f32 %v594_v62, 0.0 }
 0x1b2   :  { %v2596_v41 = vmax.f32 %v599_v49, 0.0 }
 0x1b3   :  { %v660_v52 = vadd.f32 %v659_v58, %v2547_v54  ;;  %v729_v8 = vadd.f32 %v728_v31, %v698_v61  ;;  %v705_v58 = vmul.f32 %v2588_v51, %v2588_v51  ;;  %v2601_v63 = vmax.f32 %v602_v55, 0.0 }
 0x1b4   :  { %v707_v26 = vmul.f32 %v2596_v41, %v2596_v41 }
 0x1b5   :  { %v730_v21 = vadd.f32 %v729_v8, %v699_v42  ;;  %v661_v29 = vadd.f32 %v660_v52, %v2553_v14  ;;  %v706_v42 = vmul.f32 %v2594_v4, %v2594_v4  ;;  %v708_v8 = vmul.f32 %v2601_v63, %v2601_v63 }
 0x1b7   :  { %v662_v19 = vadd.f32 %v661_v29, %v2564_v17  ;;  %v731_v28 = vadd.f32 %v730_v21, %v700_v20 }
 0x1b9   :  { %v732_v34 = vadd.f32 %v731_v28, %v701_v39  ;;  %v663_v56 = vadd.f32 %v662_v19, %v2570_v32 }
 0x1bb   :  { %v664_v18 = vadd.f32 %v663_v56, %v2572_v5  ;;  %v733_v13 = vadd.f32 %v732_v34, %v702_v37 }
 0x1bd   :  { %v734_v1 = vadd.f32 %v733_v13, %v703_v45  ;;  %v665_v3 = vadd.f32 %v664_v18, %v2578_v6 }
 0x1bf   :  { %v666_v31 = vadd.f32 %v665_v3, %v2588_v51  ;;  %v735_v59 = vadd.f32 %v734_v1, %v704_v44 }
 0x1c1   :  { %v736_v61 = vadd.f32 %v735_v59, %v705_v58  ;;  %v667_v0 = vadd.f32 %v666_v31, %v2594_v4  ;;  %v605_v31 = vld [vmem:[%s3197_s5] sm:$0x1] }
 0x1c3   :  { %v668_v25 = vadd.f32 %v667_v0, %v2596_v41  ;;  %v737_v52 = vadd.f32 %v736_v61, %v706_v42  ;;  %v606_v61 = vld [vmem:[%s3198_s6] sm:$0x1] }
 0x1c5   :  { %v669_v7 = vadd.f32 %v668_v25, %v2601_v63  ;;  %v738_v20 = vadd.f32 %v737_v52, %v707_v26 }
 0x1c7   :  { %v670_v21 = vrot.slane %v669_v7, 4  ;;  %v739_v29 = vadd.f32 %v738_v20, %v708_v8 }
 0x1c9   :  { %v671_v12 = vadd.f32 %v670_v21, %v669_v7  ;;  %v740_v19 = vrot.slane %v739_v29, 4 }
 0x1cb   :  { %v672_v39 = vrot.slane %v671_v12, 2  ;;  %v741_v28 = vadd.f32 %v740_v19, %v739_v29 }
 0x1cd   :  { %v673_v33 = vadd.f32 %v672_v39, %v671_v12  ;;  %v742_v34 = vrot.slane %v741_v28, 2 }
 0x1cf   :  { %v674_v56 = vrot.slane %v673_v33, 1  ;;  %v743_v37 = vadd.f32 %v742_v34, %v741_v28 }
 0x1d1   :  { %v675_v62 = vadd.f32 %v674_v56, %v673_v33  ;;  %v744_v45 = vrot.slane %v743_v37, 1 }
 0x1d3   :  { %v676_v18 = vmul.f32 0.00390625, %v675_v62  ;;  %v745_v13 = vadd.f32 %v744_v45, %v743_v37 }
 0x1d5   :  { %v746_v49 = vmul.f32 0.00390625, %v745_v13  ;;  %v747_v44 = vmul.f32 %v676_v18, %v676_v18 }
 0x1d7   :  { %v748_v1 = vsub.f32 %v746_v49, %v747_v44 }
 0x1d9   :  { %v749_v3 = vmax.f32 %v748_v1, 0.0 }
 0x1db   :  { %v750_v55 = vadd.f32 1e-05, %v749_v3 }
 0x1dd   :  { %1841 = vrsqrt.f32 %v750_v55 }
 0x1ea   :  { %v1842_v58 = vpop.eup %1841 }
 0x1eb   :  { %v752_v59 = vmul.f32 %v1842_v58, %v605_v31 }
 0x1ed   :  { %v753_v0 = vmul.f32 %v752_v59, %v676_v18  ;;  %v2619_v26 = vrot.slane %v752_v59, %v2243_v30 }
 0x1ef   :  { %v754_v42 = vsub.f32 %v606_v61, %v753_v0  ;;  %v763_v52 = vmul.f32 %v2619_v26, %v2404_v53  ;;  %v764_v8 = vmul.f32 %v2619_v26, %v2410_v35  ;;  %v761_v7 = vmul.f32 %v2619_v26, %v2399_v47 }
 0x1f0   :  { %v762_v20 = vmul.f32 %v2619_v26, %v2406_v24  ;;  %v765_v21 = vmul.f32 %v2619_v26, %v2425_v9  ;;  %v766_v29 = vmul.f32 %v2619_v26, %v2441_v38  ;;  %v767_v9 = vmul.f32 %v2619_v26, %v2436_v2 }
 0x1f1   :  { %v2622_v25 = vrot.slane %v754_v42, %v2243_v30  ;;  %v768_v38 = vmul.f32 %v2619_v26, %v2445_v22  ;;  %v769_v34 = vmul.f32 %v2619_v26, %v2457_v36  ;;  %v770_v56 = vmul.f32 %v2619_v26, %v2469_v15 }
 0x1f2   :  { %v771_v22 = vmul.f32 %v2619_v26, %v2464_v23  ;;  %v772_v36 = vmul.f32 %v2619_v26, %v2471_v16  ;;  %v773_v15 = vmul.f32 %v2619_v26, %v2480_v43  ;;  %v774_v49 = vmul.f32 %v2619_v26, %v2497_v27 }
 0x1f3   :  { %v801_v12 = vadd.f32 %v2622_v25, %v763_v52  ;;  %v802_v19 = vadd.f32 %v2622_v25, %v764_v8  ;;  %v799_v53 = vadd.f32 %v2622_v25, %v761_v7  ;;  %v800_v35 = vadd.f32 %v2622_v25, %v762_v20 }
 0x1f4   :  { %v803_v39 = vadd.f32 %v2622_v25, %v765_v21  ;;  %v804_v47 = vadd.f32 %v2622_v25, %v766_v29  ;;  %v805_v37 = vadd.f32 %v2622_v25, %v767_v9  ;;  %v806_v62 = vadd.f32 %v2622_v25, %v768_v38 }
 0x1f5   :  { %v849_v28 = vpack.c.bf16 %v802_v19, %v801_v12  ;;  %v848_v24 = vpack.c.bf16 %v800_v35, %v799_v53  ;;  %v807_v45 = vadd.f32 %v2622_v25, %v769_v34  ;;  %v808_v18 = vadd.f32 %v2622_v25, %v770_v56 }
 0x1f6   :  { %v850_v33 = vpack.c.bf16 %v804_v47, %v803_v39  ;;  %v851_v2 = vpack.c.bf16 %v806_v62, %v805_v37  ;;  %v809_v44 = vadd.f32 %v2622_v25, %v771_v22  ;;  %v810_v1 = vadd.f32 %v2622_v25, %v772_v36  ;;  %v2747_v36 = vld [vmem:[%s3200_s8] ss:$0 sm:$0xff] }
 0x1f7   :  { %1740 = vmatprep.mubr.bf16.mxu1 %v848_v24  ;;  %v852_v13 = vpack.c.bf16 %v808_v18, %v807_v45  ;;  %v811_v3 = vadd.f32 %v2622_v25, %v773_v15  ;;  %v812_v55 = vadd.f32 %v2622_v25, %v774_v49  ;;  %v775_v16 = vmul.f32 %v2619_v26, %v2493_v11  ;;  %v1831_v45 = vld [vmem:[%s3199_s11 + $0x38] sm:$0xff]   ;;  %v1836_v18 = vld [vmem:[%s3199_s11 + $0x10] sm:$0xff]  }
 0x1f8   :  { %1741 = vmatmul.mubr.bf16.vlgmr.msra.gmra.mxu1 %v849_v28  ;;  %v853_v23 = vpack.c.bf16 %v810_v1, %v809_v44  ;;  %v776_v43 = vmul.f32 %v2619_v26, %v2499_v57  ;;  %v777_v27 = vmul.f32 %v2619_v26, %v2510_v40  ;;  %v778_v58 = vmul.f32 %v2619_v26, %v2517_v46 }
 0x1f9   :  { %1744 = vmatprep.mubr.bf16.mxu1 %v850_v33  ;;  %v854_v31 = vpack.c.bf16 %v812_v55, %v811_v3  ;;  %v813_v59 = vadd.f32 %v2622_v25, %v775_v16  ;;  %v779_v57 = vmul.f32 %v2619_v26, %v2520_v10  ;;  %v780_v40 = vmul.f32 %v2619_v26, %v2527_v50 }
 0x1fa   :  { %v814_v61 = vadd.f32 %v2622_v25, %v776_v43  ;;  %v815_v0 = vadd.f32 %v2622_v25, %v777_v27  ;;  %v816_v42 = vadd.f32 %v2622_v25, %v778_v58  ;;  %v781_v46 = vmul.f32 %v2619_v26, %v2538_v48  ;;  %1772 = vmatprep.subr.bf16.mxu0 %v1831_v45 }
 0x1fb   :  { %v782_v8 = vmul.f32 %v2619_v26, %v2545_v60  ;;  %v817_v7 = vadd.f32 %v2622_v25, %v779_v57  ;;  %v818_v20 = vadd.f32 %v2622_v25, %v780_v40  ;;  %v783_v50 = vmul.f32 %v2619_v26, %v2547_v54  ;;  %1773 = vmatpush3.bf16.msra.mxu0 %v1831_v45 }
 0x1fc   :  { %v855_v11 = vpack.c.bf16 %v814_v61, %v813_v59  ;;  %v856_v52 = vpack.c.bf16 %v816_v42, %v815_v0  ;;  %v819_v21 = vadd.f32 %v2622_v25, %v781_v46  ;;  %v784_v48 = vmul.f32 %v2619_v26, %v2553_v14 }
 0x1fd   :  { %v820_v29 = vadd.f32 %v2622_v25, %v782_v8  ;;  %v857_v10 = vpack.c.bf16 %v818_v20, %v817_v7  ;;  %v785_v60 = vmul.f32 %v2619_v26, %v2564_v17  ;;  %v786_v19 = vmul.f32 %v2619_v26, %v2570_v32 }
 0x1fe   :  { %v821_v53 = vadd.f32 %v2622_v25, %v783_v50  ;;  %v822_v35 = vadd.f32 %v2622_v25, %v784_v48  ;;  %v787_v14 = vmul.f32 %v2619_v26, %v2572_v5  ;;  %v788_v17 = vmul.f32 %v2619_v26, %v2578_v6 }
 0x1ff   :  { %v858_v12 = vpack.c.bf16 %v820_v29, %v819_v21  ;;  %v823_v39 = vadd.f32 %v2622_v25, %v785_v60  ;;  %v824_v47 = vadd.f32 %v2622_v25, %v786_v19  ;;  %v790_v32 = vmul.f32 %v2619_v26, %v2594_v4 }
 0x200   :  { %1745 = vmatmul.mubr.bf16.gmra.mxu1 %v851_v2  ;;  %v859_v54 = vpack.c.bf16 %v822_v35, %v821_v53  ;;  %v789_v24 = vmul.f32 %v2619_v26, %v2588_v51  ;;  %v825_v33 = vadd.f32 %v2622_v25, %v787_v14  ;;  %v826_v9 = vadd.f32 %v2622_v25, %v788_v17  ;;  %v1837_v2 = vld [vmem:[%s3199_s11 + $0x8] sm:$0xff]  }
 0x201   :  { %1748 = vmatprep.mubr.bf16.mxu1 %v852_v13  ;;  %v860_v28 = vpack.c.bf16 %v824_v47, %v823_v39  ;;  %v828_v34 = vadd.f32 %v2622_v25, %v790_v32  ;;  %v791_v6 = vmul.f32 %v2619_v26, %v2596_v41  ;;  %v792_v4 = vmul.f32 %v2619_v26, %v2601_v63  ;;  %v1832_v41 = vld [vmem:[%s3199_s11 + $0x30] sm:$0xff]   ;;  %v1833_v63 = vld [vmem:[%s3199_s11 + $0x28] sm:$0xff]   ;;  %v1834_v26 = vld [vmem:[%s3199_s11 + $0x20] sm:$0xff]  }
 0x202   :  { %v827_v38 = vadd.f32 %v2622_v25, %v789_v24  ;;  %v861_v5 = vpack.c.bf16 %v826_v9, %v825_v33  ;;  %1774 = vmatprep.subr.bf16.mxu0 %v1832_v41  ;;  %v1838_v13 = vld [vmem:[%s3199_s11] sm:$0xff]  }
 0x203   :  { %v829_v51 = vadd.f32 %v2622_v25, %v791_v6  ;;  %v830_v37 = vadd.f32 %v2622_v25, %v792_v4  ;;  %1775 = vmatpush3.bf16.msra.mxu0 %v1832_v41  ;;  %v1835_v25 = vld [vmem:[%s3199_s11 + $0x18] sm:$0xff]  }
 0x204   :  { %v862_v56 = vpack.c.bf16 %v828_v34, %v827_v38  ;;  %1776 = vmatprep.subr.bf16.mxu0 %v1833_v63 }
 0x205   :  { %v863_v62 = vpack.c.bf16 %v830_v37, %v829_v51 }
 0x207   :  { %1777 = vmatpush3.bf16.msra.mxu0 %v1833_v63 }
 0x208   :  { %1749 = vmatmul.mubr.bf16.gmra.mxu1 %v853_v23  ;;  %1778 = vmatprep.subr.bf16.mxu0 %v1834_v26 }
 0x209   :  { %1752 = vmatprep.mubr.bf16.mxu1 %v854_v31 }
 0x20b   :  { %1779 = vmatpush3.bf16.msra.mxu0 %v1834_v26 }
 0x20c   :  { %1780 = vmatprep.subr.bf16.mxu0 %v1835_v25 }
 0x20f   :  { %1781 = vmatpush3.bf16.msra.mxu0 %v1835_v25 }
 0x210   :  { %1753 = vmatmul.mubr.bf16.gmra.mxu1 %v855_v11  ;;  %1782 = vmatprep.subr.bf16.mxu0 %v1836_v18 }
 0x211   :  { %1756 = vmatprep.mubr.bf16.mxu1 %v856_v52 }
 0x213   :  { %1783 = vmatpush3.bf16.msra.mxu0 %v1836_v18 }
 0x214   :  { %1784 = vmatprep.subr.bf16.mxu0 %v1837_v2 }
 0x217   :  { %1785 = vmatpush3.bf16.msra.mxu0 %v1837_v2 }
 0x218   :  { %1757 = vmatmul.mubr.bf16.gmra.mxu1 %v857_v10  ;;  %1786 = vmatprep.subr.bf16.mxu0 %v1838_v13 }
 0x219   :  { %1760 = vmatprep.mubr.bf16.mxu1 %v858_v12 }
 0x21b   :  { %1787 = vmatpush3.bf16.msra.mxu0 %v1838_v13 }
 0x220   :  { %1761 = vmatmul.mubr.bf16.gmra.mxu1 %v859_v54 }
 0x221   :  { %1764 = vmatprep.mubr.bf16.mxu1 %v860_v28 }
 0x228   :  { %1765 = vmatmul.mubr.bf16.gmra.mxu1 %v861_v5 }
 0x229   :  { %1768 = vmatprep.mubr.bf16.mxu1 %v862_v56 }
 0x230   :  { %1769 = vmatmul.mubr.bf16.gmra.mxu1 %v863_v62 }
 0x2b8   :  { %v1742_v22 = vpop.f32.mrf.mxu1 }
 0x2b9   :  { %v961_v1 = vadd.f32 %v1742_v22, %v2747_v36 }
 0x2ba   :  { %v952_v15 = vpop.f32.mrf.mxu1 }
 0x2bb   :  { %v953_v49 = vadd.f32 %v2747_v36, %v952_v15  ;;  %v2755_v43 = vmax.f32 %v961_v1, 0.0 }
 0x2bc   :  { %v1743_v44 = vpop.f32.mrf.mxu1 }
 0x2bd   :  { %v964_v3 = vadd.f32 %v1743_v44, %v2747_v36  ;;  %v2752_v23 = vmax.f32 %v953_v49, 0.0  ;;  %v1153_v40 = vmul.f32 %v2755_v43, %v2755_v43 }
 0x2be   :  { %v955_v55 = vpop.f32.mrf.mxu1 }
 0x2bf   :  { %v956_v31 = vadd.f32 %v2747_v36, %v955_v55  ;;  %v2759_v58 = vmax.f32 %v964_v3, 0.0  ;;  %v1151_v61 = vmul.f32 %v2752_v23, %v2752_v23 }
 0x2c0   :  { %v1746_v16 = vpop.f32.mrf.mxu1 }
 0x2c1   :  { %v2757_v27 = vmax.f32 %v956_v31, 0.0  ;;  %v977_v52 = vadd.f32 %v1746_v16, %v2747_v36  ;;  %v1154_v20 = vmul.f32 %v2759_v58, %v2759_v58 }
 0x2c2   :  { %v968_v59 = vpop.f32.mrf.mxu1 }
 0x2c3   :  { %v1113_v0 = vadd.f32 %v2757_v27, %v2752_v23  ;;  %v1152_v42 = vmul.f32 %v2757_v27, %v2757_v27  ;;  %v969_v11 = vadd.f32 %v2747_v36, %v968_v59  ;;  %v2779_v48 = vmax.f32 %v977_v52, 0.0 }
 0x2c4   :  { %v1747_v57 = vpop.f32.mrf.mxu1 }
 0x2c5   :  { %v1114_v46 = vadd.f32 %v1113_v0, %v2755_v43  ;;  %v1183_v8 = vadd.f32 %v1152_v42, %v1151_v61  ;;  %v2772_v7 = vmax.f32 %v969_v11, 0.0  ;;  %v980_v12 = vadd.f32 %v1747_v57, %v2747_v36 }
 0x2c6   :  { %v971_v21 = vpop.f32.mrf.mxu1  ;;  %v1157_v9 = vmul.f32 %v2779_v48, %v2779_v48 }
 0x2c7   :  { %v1184_v29 = vadd.f32 %v1183_v8, %v1153_v40  ;;  %v1115_v10 = vadd.f32 %v1114_v46, %v2759_v58  ;;  %v972_v50 = vadd.f32 %v2747_v36, %v971_v21  ;;  %v1155_v53 = vmul.f32 %v2772_v7, %v2772_v7 }
 0x2c8   :  { %v1750_v60 = vpop.f32.mrf.mxu1  ;;  %v2786_v28 = vmax.f32 %v980_v12, 0.0 }
 0x2c9   :  { %v1116_v19 = vadd.f32 %v1115_v10, %v2772_v7  ;;  %v1185_v35 = vadd.f32 %v1184_v29, %v1154_v20  ;;  %v2784_v39 = vmax.f32 %v972_v50, 0.0  ;;  %v993_v32 = vadd.f32 %v1750_v60, %v2747_v36 }
 0x2ca   :  { %v984_v47 = vpop.f32.mrf.mxu1  ;;  %v1158_v4 = vmul.f32 %v2786_v28, %v2786_v28 }
 0x2cb   :  { %v1186_v54 = vadd.f32 %v1185_v35, %v1155_v53  ;;  %v1117_v14 = vadd.f32 %v1116_v19, %v2784_v39  ;;  %v1156_v17 = vmul.f32 %v2784_v39, %v2784_v39  ;;  %v985_v24 = vadd.f32 %v2747_v36, %v984_v47 }
 0x2cc   :  { %v1751_v33 = vpop.f32.mrf.mxu1  ;;  %v2803_v45 = vmax.f32 %v993_v32, 0.0 }
 0x2cd   :  { %v1118_v38 = vadd.f32 %v1117_v14, %v2779_v48  ;;  %v1187_v34 = vadd.f32 %v1186_v54, %v1156_v17  ;;  %v2796_v5 = vmax.f32 %v985_v24, 0.0  ;;  %v996_v56 = vadd.f32 %v1751_v33, %v2747_v36 }
 0x2ce   :  { %v987_v6 = vpop.f32.mrf.mxu1  ;;  %v1161_v3 = vmul.f32 %v2803_v45, %v2803_v45 }
 0x2cf   :  { %v1188_v51 = vadd.f32 %v1187_v34, %v1157_v9  ;;  %v1119_v37 = vadd.f32 %v1118_v38, %v2786_v28  ;;  %v988_v62 = vadd.f32 %v2747_v36, %v987_v6  ;;  %v1159_v26 = vmul.f32 %v2796_v5, %v2796_v5 }
 0x2d0   :  { %v1754_v41 = vpop.f32.mrf.mxu1  ;;  %v2810_v2 = vmax.f32 %v996_v56, 0.0 }
 0x2d1   :  { %v1120_v63 = vadd.f32 %v1119_v37, %v2796_v5  ;;  %v1189_v25 = vadd.f32 %v1188_v51, %v1158_v4  ;;  %v2808_v18 = vmax.f32 %v988_v62, 0.0  ;;  %v1009_v59 = vadd.f32 %v1754_v41, %v2747_v36 }
 0x2d2   :  { %v1000_v13 = vpop.f32.mrf.mxu1  ;;  %v1162_v0 = vmul.f32 %v2810_v2, %v2810_v2 }
 0x2d3   :  { %v1190_v22 = vadd.f32 %v1189_v25, %v1159_v26  ;;  %v1121_v15 = vadd.f32 %v1120_v63, %v2808_v18  ;;  %v1160_v49 = vmul.f32 %v2808_v18, %v2808_v18  ;;  %v1001_v44 = vadd.f32 %v2747_v36, %v1000_v13 }
 0x2d4   :  { %v1755_v1 = vpop.f32.mrf.mxu1  ;;  %v2830_v21 = vmax.f32 %v1009_v59, 0.0 }
 0x2d5   :  { %v1122_v55 = vadd.f32 %v1121_v15, %v2803_v45  ;;  %v1191_v31 = vadd.f32 %v1190_v22, %v1160_v49  ;;  %v2819_v16 = vmax.f32 %v1001_v44, 0.0  ;;  %v1012_v52 = vadd.f32 %v1755_v1, %v2747_v36 }
 0x2d6   :  { %v1003_v61 = vpop.f32.mrf.mxu1  ;;  %v1165_v54 = vmul.f32 %v2830_v21, %v2830_v21 }
 0x2d7   :  { %v1192_v42 = vadd.f32 %v1191_v31, %v1161_v3  ;;  %v1123_v11 = vadd.f32 %v1122_v55, %v2810_v2  ;;  %v1004_v57 = vadd.f32 %v2747_v36, %v1003_v61  ;;  %v1163_v8 = vmul.f32 %v2819_v16, %v2819_v16 }
 0x2d8   :  { %v1758_v40 = vpop.f32.mrf.mxu1  ;;  %v2835_v60 = vmax.f32 %v1012_v52, 0.0 }
 0x2d9   :  { %v1124_v46 = vadd.f32 %v1123_v11, %v2819_v16  ;;  %v1193_v20 = vadd.f32 %v1192_v42, %v1162_v0  ;;  %v2832_v29 = vmax.f32 %v1004_v57, 0.0  ;;  %v1025_v47 = vadd.f32 %v1758_v40, %v2747_v36 }
 0x2da   :  { %v1016_v10 = vpop.f32.mrf.mxu1  ;;  %v1166_v9 = vmul.f32 %v2835_v60, %v2835_v60 }
 0x2db   :  { %v1194_v12 = vadd.f32 %v1193_v20, %v1163_v8  ;;  %v1017_v50 = vadd.f32 %v2747_v36, %v1016_v10  ;;  %v1125_v19 = vadd.f32 %v1124_v46, %v2832_v29  ;;  %v1164_v53 = vmul.f32 %v2832_v29, %v2832_v29 }
 0x2dc   :  { %v1759_v35 = vpop.f32.mrf.mxu1  ;;  %v2851_v4 = vmax.f32 %v1025_v47, 0.0 }
 0x2dd   :  { %v1126_v14 = vadd.f32 %v1125_v19, %v2830_v21  ;;  %v1195_v17 = vadd.f32 %v1194_v12, %v1164_v53  ;;  %v2844_v32 = vmax.f32 %v1017_v50, 0.0  ;;  %v1028_v56 = vadd.f32 %v1759_v35, %v2747_v36 }
 0x2de   :  { %v1019_v24 = vpop.f32.mrf.mxu1  ;;  %v1169_v44 = vmul.f32 %v2851_v4, %v2851_v4 }
 0x2df   :  { %v1020_v33 = vadd.f32 %v2747_v36, %v1019_v24  ;;  %v1196_v38 = vadd.f32 %v1195_v17, %v1165_v54  ;;  %v1127_v34 = vadd.f32 %v1126_v14, %v2835_v60  ;;  %v1167_v62 = vmul.f32 %v2844_v32, %v2844_v32 }
 0x2e0   :  { %v1762_v6 = vpop.f32.mrf.mxu1  ;;  %v2861_v22 = vmax.f32 %v1028_v56, 0.0 }
 0x2e1   :  { %v2853_v51 = vmax.f32 %v1020_v33, 0.0  ;;  %v1128_v37 = vadd.f32 %v1127_v34, %v2844_v32  ;;  %v1197_v41 = vadd.f32 %v1196_v38, %v1166_v9  ;;  %v1041_v55 = vadd.f32 %v1762_v6, %v2747_v36 }
 0x2e2   :  { %v1032_v63 = vpop.f32.mrf.mxu1  ;;  %v1170_v0 = vmul.f32 %v2861_v22, %v2861_v22 }
 0x2e3   :  { %v1168_v26 = vmul.f32 %v2853_v51, %v2853_v51  ;;  %v1033_v25 = vadd.f32 %v2747_v36, %v1032_v63  ;;  %v1198_v13 = vadd.f32 %v1197_v41, %v1167_v62  ;;  %v1129_v15 = vadd.f32 %v1128_v37, %v2853_v51 }
 0x2e4   :  { %v1763_v49 = vpop.f32.mrf.mxu1  ;;  %v2877_v46 = vmax.f32 %v1041_v55, 0.0 }
 0x2e5   :  { %v1130_v1 = vadd.f32 %v1129_v15, %v2851_v4  ;;  %v1199_v3 = vadd.f32 %v1198_v13, %v1168_v26  ;;  %v2868_v31 = vmax.f32 %v1033_v25, 0.0  ;;  %v1044_v52 = vadd.f32 %v1763_v49, %v2747_v36 }
 0x2e6   :  { %v1035_v59 = vpop.f32.mrf.mxu1  ;;  %v1173_v17 = vmul.f32 %v2877_v46, %v2877_v46 }
 0x2e7   :  { %v1036_v61 = vadd.f32 %v2747_v36, %v1035_v59  ;;  %v1200_v42 = vadd.f32 %v1199_v3, %v1169_v44  ;;  %v1131_v11 = vadd.f32 %v1130_v1, %v2861_v22  ;;  %v1171_v20 = vmul.f32 %v2868_v31, %v2868_v31 }
 0x2e8   :  { %v1766_v57 = vpop.f32.mrf.mxu1  ;;  %v2885_v35 = vmax.f32 %v1044_v52, 0.0 }
 0x2e9   :  { %v2875_v40 = vmax.f32 %v1036_v61, 0.0  ;;  %v1132_v8 = vadd.f32 %v1131_v11, %v2868_v31  ;;  %v1201_v10 = vadd.f32 %v1200_v42, %v1170_v0  ;;  %v1057_v14 = vadd.f32 %v1766_v57, %v2747_v36 }
 0x2ea   :  { %v1048_v12 = vpop.f32.mrf.mxu1  ;;  %v1174_v56 = vmul.f32 %v2885_v35, %v2885_v35 }
 0x2eb   :  { %v1172_v50 = vmul.f32 %v2875_v40, %v2875_v40  ;;  %v1049_v19 = vadd.f32 %v2747_v36, %v1048_v12  ;;  %v1202_v53 = vadd.f32 %v1201_v10, %v1171_v20  ;;  %v1133_v47 = vadd.f32 %v1132_v8, %v2875_v40 }
 0x2ec   :  { %v1767_v54 = vpop.f32.mrf.mxu1  ;;  %v2899_v63 = vmax.f32 %v1057_v14, 0.0 }
 0x2ed   :  { %v1134_v24 = vadd.f32 %v1133_v47, %v2877_v46  ;;  %v1203_v33 = vadd.f32 %v1202_v53, %v1172_v50  ;;  %v2892_v9 = vmax.f32 %v1049_v19, 0.0  ;;  %v1060_v62 = vadd.f32 %v1767_v54, %v2747_v36 }
 0x2ee   :  { %v1051_v38 = vpop.f32.mrf.mxu1  ;;  %v1177_v0 = vmul.f32 %v2899_v63, %v2899_v63 }
 0x2ef   :  { %v1052_v34 = vadd.f32 %v2747_v36, %v1051_v38  ;;  %v1204_v6 = vadd.f32 %v1203_v33, %v1173_v17  ;;  %v1135_v37 = vadd.f32 %v1134_v24, %v2885_v35  ;;  %v1175_v13 = vmul.f32 %v2892_v9, %v2892_v9 }
 0x2f0   :  { %v1770_v41 = vpop.f32.mrf.mxu1  ;;  %v2909_v55 = vmax.f32 %v1060_v62, 0.0 }
 0x2f1   :  { %v2901_v26 = vmax.f32 %v1052_v34, 0.0  ;;  %v1136_v25 = vadd.f32 %v1135_v37, %v2892_v9  ;;  %v1205_v15 = vadd.f32 %v1204_v6, %v1174_v56  ;;  %v1073_v52 = vadd.f32 %v1770_v41, %v2747_v36 }
 0x2f2   :  { %v1064_v49 = vpop.f32.mrf.mxu1  ;;  %v1178_v10 = vmul.f32 %v2909_v55, %v2909_v55 }
 0x2f3   :  { %v1176_v44 = vmul.f32 %v2901_v26, %v2901_v26  ;;  %v1065_v1 = vadd.f32 %v2747_v36, %v1064_v49  ;;  %v1206_v3 = vadd.f32 %v1205_v15, %v1175_v13  ;;  %v1137_v59 = vadd.f32 %v1136_v25, %v2901_v26 }
 0x2f4   :  { %v1771_v61 = vpop.f32.mrf.mxu1  ;;  %v2925_v47 = vmax.f32 %v1073_v52, 0.0 }
 0x2f5   :  { %v1138_v42 = vadd.f32 %v1137_v59, %v2899_v63  ;;  %v1207_v11 = vadd.f32 %v1206_v3, %v1176_v44  ;;  %v2916_v57 = vmax.f32 %v1065_v1, 0.0  ;;  %v1076_v19 = vadd.f32 %v1771_v61, %v2747_v36 }
 0x2f6   :  { %v1067_v8 = vpop.f32.mrf.mxu1 }
 0x2f7   :  { %v1068_v20 = vadd.f32 %v2747_v36, %v1067_v8  ;;  %v1208_v12 = vadd.f32 %v1207_v11, %v1177_v0  ;;  %v1139_v50 = vadd.f32 %v1138_v42, %v2909_v55  ;;  %v1179_v14 = vmul.f32 %v2916_v57, %v2916_v57 }
 0x2f8   :  { %v2932_v38 = vmax.f32 %v1076_v19, 0.0  ;;  %v1181_v36 = vmul.f32 %v2925_v47, %v2925_v47 }
 0x2f9   :  { %v2923_v53 = vmax.f32 %v1068_v20, 0.0  ;;  %v1140_v54 = vadd.f32 %v1139_v50, %v2916_v57  ;;  %v1209_v17 = vadd.f32 %v1208_v12, %v1178_v10 }
 0x2fa   :  { %v1182_v37 = vmul.f32 %v2932_v38, %v2932_v38 }
 0x2fb   :  { %v1180_v24 = vmul.f32 %v2923_v53, %v2923_v53  ;;  %v1210_v33 = vadd.f32 %v1209_v17, %v1179_v14  ;;  %v1141_v34 = vadd.f32 %v1140_v54, %v2923_v53  ;;  %v1079_v54 = vld [vmem:[%s3201_s9] sm:$0x1] }
 0x2fd   :  { %v1142_v56 = vadd.f32 %v1141_v34, %v2925_v47  ;;  %v1211_v6 = vadd.f32 %v1210_v33, %v1180_v24  ;;  %v1080_v24 = vld [vmem:[%s3202_s10] sm:$0x1] }
 0x2ff   :  { %v1143_v62 = vadd.f32 %v1142_v56, %v2932_v38  ;;  %v1212_v41 = vadd.f32 %v1211_v6, %v1181_v36 }
 0x301   :  { %v1144_v25 = vrot.slane %v1143_v62, 4  ;;  %v1213_v13 = vadd.f32 %v1212_v41, %v1182_v37 }
 0x303   :  { %v1145_v15 = vadd.f32 %v1144_v25, %v1143_v62  ;;  %v1214_v49 = vrot.slane %v1213_v13, 4 }
 0x305   :  { %v1146_v44 = vrot.slane %v1145_v15, 2  ;;  %v1215_v1 = vadd.f32 %v1214_v49, %v1213_v13 }
 0x307   :  { %v1147_v3 = vadd.f32 %v1146_v44, %v1145_v15  ;;  %v1216_v59 = vrot.slane %v1215_v1, 2 }
 0x309   :  { %v1148_v61 = vrot.slane %v1147_v3, 1  ;;  %v1217_v0 = vadd.f32 %v1216_v59, %v1215_v1 }
 0x30b   :  { %v1149_v42 = vadd.f32 %v1148_v61, %v1147_v3  ;;  %v1218_v11 = vrot.slane %v1217_v0, 1 }
 0x30d   :  { %v1150_v52 = vmul.f32 0.00390625, %v1149_v42  ;;  %v1219_v8 = vadd.f32 %v1218_v11, %v1217_v0 }
 0x30f   :  { %v1220_v20 = vmul.f32 0.00390625, %v1219_v8  ;;  %v1221_v10 = vmul.f32 %v1150_v52, %v1150_v52 }
 0x311   :  { %v1222_v12 = vsub.f32 %v1220_v20, %v1221_v10 }
 0x313   :  { %v1223_v50 = vmax.f32 %v1222_v12, 0.0 }
 0x315   :  { %v1224_v19 = vadd.f32 1e-05, %v1223_v50 }
 0x317   :  { %1843 = vrsqrt.f32 %v1224_v19 }
 0x324   :  { %v1844_v14 = vpop.eup %1843 }
 0x325   :  { %v1226_v17 = vmul.f32 %v1844_v14, %v1079_v54 }
 0x327   :  { %v1227_v33 = vmul.f32 %v1226_v17, %v1150_v52  ;;  %v2948_v36 = vrot.slane %v1226_v17, %v2243_v30 }
 0x329   :  { %v1228_v34 = vsub.f32 %v1080_v24, %v1227_v33  ;;  %v1237_v6 = vmul.f32 %v2948_v36, %v2755_v43  ;;  %v1238_v37 = vmul.f32 %v2948_v36, %v2759_v58  ;;  %v1235_v62 = vmul.f32 %v2948_v36, %v2752_v23 }
 0x32a   :  { %v1236_v41 = vmul.f32 %v2948_v36, %v2757_v27  ;;  %v1239_v25 = vmul.f32 %v2948_v36, %v2772_v7  ;;  %v1240_v13 = vmul.f32 %v2948_v36, %v2784_v39  ;;  %v1241_v7 = vmul.f32 %v2948_v36, %v2779_v48 }
 0x32b   :  { %v2951_v56 = vrot.slane %v1228_v34, %v2243_v30  ;;  %v1242_v39 = vmul.f32 %v2948_v36, %v2786_v28  ;;  %v1243_v3 = vmul.f32 %v2948_v36, %v2796_v5  ;;  %v1244_v59 = vmul.f32 %v2948_v36, %v2808_v18 }
 0x32c   :  { %v1264_v61 = vmul.f32 %v2948_v36, %v2923_v53  ;;  %v1263_v0 = vmul.f32 %v2948_v36, %v2916_v57  ;;  %v1265_v28 = vmul.f32 %v2948_v36, %v2925_v47  ;;  %v1266_v5 = vmul.f32 %v2948_v36, %v2932_v38 }
 0x32d   :  { %v1275_v30 = vadd.f32 %v2951_v56, %v1237_v6  ;;  %v1276_v15 = vadd.f32 %v2951_v56, %v1238_v37  ;;  %v1273_v43 = vadd.f32 %v2951_v56, %v1235_v62  ;;  %v1274_v58 = vadd.f32 %v2951_v56, %v1236_v41 }
 0x32e   :  { %v1277_v49 = vadd.f32 %v2951_v56, %v1239_v25  ;;  %v1278_v23 = vadd.f32 %v2951_v56, %v1240_v13  ;;  %v1279_v42 = vadd.f32 %v2951_v56, %v1241_v7  ;;  %v1280_v48 = vadd.f32 %v2951_v56, %v1242_v39 }
 0x32f   :  { %v1323_v44 = vpack.c.bf16 %v1276_v15, %v1275_v30  ;;  %v1322_v27 = vpack.c.bf16 %v1274_v58, %v1273_v43  ;;  %v1281_v11 = vadd.f32 %v2951_v56, %v1243_v3  ;;  %v1282_v18 = vadd.f32 %v2951_v56, %v1244_v59 }
 0x330   :  { %v1324_v1 = vpack.c.bf16 %v1278_v23, %v1277_v49  ;;  %v2992_v52 = vadd.f32 %v2951_v56, %v1263_v0  ;;  %v2995_v53 = vadd.f32 %v2951_v56, %v1264_v61  ;;  %v2998_v57 = vadd.f32 %v2951_v56, %v1265_v28  ;;  %v3061_v0 = vld [vmem:[%s3203_s12] ss:$0 sm:$0xff] }
 0x331   :  { %1788 = vmatprep.mubr.bf16.mxu0 %v1322_v27  ;;  %v1304_v8 = vadd.f32 %v2951_v56, %v1266_v5  ;;  %v1325_v20 = vpack.c.bf16 %v1280_v48, %v1279_v42  ;;  %v1326_v38 = vpack.c.bf16 %v1282_v18, %v1281_v11  ;;  %v1245_v12 = vmul.f32 %v2948_v36, %v2803_v45 }
 0x332   :  { %1789 = vmatmul.mubr.bf16.vlgmr.msra.gmra.mxu0 %v1323_v44  ;;  %v1336_v47 = vpack.c.bf16 %v2995_v53, %v2992_v52  ;;  %v1246_v50 = vmul.f32 %v2948_v36, %v2810_v2  ;;  %v1247_v19 = vmul.f32 %v2948_v36, %v2819_v16  ;;  %v1248_v54 = vmul.f32 %v2948_v36, %v2832_v29 }
 0x333   :  { %1792 = vmatprep.mubr.bf16.mxu0 %v1324_v1  ;;  %v1337_v10 = vpack.c.bf16 %v1304_v8, %v2998_v57  ;;  %v1283_v14 = vadd.f32 %v2951_v56, %v1245_v12  ;;  %v1249_v2 = vmul.f32 %v2948_v36, %v2830_v21  ;;  %v1250_v16 = vmul.f32 %v2948_v36, %v2835_v60 }
 0x334   :  { %v1284_v17 = vadd.f32 %v2951_v56, %v1246_v50  ;;  %v1285_v24 = vadd.f32 %v2951_v56, %v1247_v19  ;;  %v1286_v33 = vadd.f32 %v2951_v56, %v1248_v54  ;;  %v1251_v29 = vmul.f32 %v2948_v36, %v2844_v32 }
 0x335   :  { %v1252_v6 = vmul.f32 %v2948_v36, %v2853_v51  ;;  %v1287_v37 = vadd.f32 %v2951_v56, %v1249_v2  ;;  %v1288_v62 = vadd.f32 %v2951_v56, %v1250_v16  ;;  %v1253_v60 = vmul.f32 %v2948_v36, %v2851_v4 }
 0x336   :  { %v1327_v45 = vpack.c.bf16 %v1284_v17, %v1283_v14  ;;  %v1328_v34 = vpack.c.bf16 %v1286_v33, %v1285_v24  ;;  %v1289_v41 = vadd.f32 %v2951_v56, %v1251_v29  ;;  %v1254_v32 = vmul.f32 %v2948_v36, %v2861_v22 }
 0x337   :  { %v1290_v25 = vadd.f32 %v2951_v56, %v1252_v6  ;;  %v1329_v21 = vpack.c.bf16 %v1288_v62, %v1287_v37  ;;  %v1255_v51 = vmul.f32 %v2948_v36, %v2868_v31  ;;  %v1256_v30 = vmul.f32 %v2948_v36, %v2875_v40 }
 0x338   :  { %v1291_v15 = vadd.f32 %v2951_v56, %v1253_v60  ;;  %v1292_v43 = vadd.f32 %v2951_v56, %v1254_v32  ;;  %v1257_v22 = vmul.f32 %v2948_v36, %v2877_v46  ;;  %v1258_v31 = vmul.f32 %v2948_v36, %v2885_v35 }
 0x339   :  { %v1330_v13 = vpack.c.bf16 %v1290_v25, %v1289_v41  ;;  %v1293_v58 = vadd.f32 %v2951_v56, %v1255_v51  ;;  %v1294_v49 = vadd.f32 %v2951_v56, %v1256_v30  ;;  %v1259_v40 = vmul.f32 %v2948_v36, %v2892_v9 }
 0x33a   :  { %1793 = vmatmul.mubr.bf16.gmra.mxu0 %v1325_v20  ;;  %v1331_v4 = vpack.c.bf16 %v1292_v43, %v1291_v15  ;;  %v1260_v44 = vmul.f32 %v2948_v36, %v2901_v26  ;;  %v1295_v27 = vadd.f32 %v2951_v56, %v1257_v22  ;;  %v1296_v1 = vadd.f32 %v2951_v56, %v1258_v31 }
 0x33b   :  { %1796 = vmatprep.mubr.bf16.mxu0 %v1326_v38  ;;  %v1332_v23 = vpack.c.bf16 %v1294_v49, %v1293_v58  ;;  %v1297_v7 = vadd.f32 %v2951_v56, %v1259_v40  ;;  %v1261_v35 = vmul.f32 %v2948_v36, %v2899_v63  ;;  %v1262_v9 = vmul.f32 %v2948_v36, %v2909_v55 }
 0x33c   :  { %v1298_v39 = vadd.f32 %v2951_v56, %v1260_v44  ;;  %v1333_v46 = vpack.c.bf16 %v1296_v1, %v1295_v27 }
 0x33d   :  { %v1299_v26 = vadd.f32 %v2951_v56, %v1261_v35  ;;  %v1300_v59 = vadd.f32 %v2951_v56, %v1262_v9 }
 0x33e   :  { %v1334_v3 = vpack.c.bf16 %v1298_v39, %v1297_v7 }
 0x33f   :  { %v1335_v61 = vpack.c.bf16 %v1300_v59, %v1299_v26 }
 0x342   :  { %1797 = vmatmul.mubr.bf16.gmra.mxu0 %v1327_v45 }
 0x343   :  { %1800 = vmatprep.mubr.bf16.mxu0 %v1328_v34 }
 0x34a   :  { %1801 = vmatmul.mubr.bf16.gmra.mxu0 %v1329_v21 }
 0x34b   :  { %1804 = vmatprep.mubr.bf16.mxu0 %v1330_v13 }
 0x352   :  { %1805 = vmatmul.mubr.bf16.gmra.mxu0 %v1331_v4 }
 0x353   :  { %1808 = vmatprep.mubr.bf16.mxu0 %v1332_v23 }
 0x35a   :  { %1809 = vmatmul.mubr.bf16.gmra.mxu0 %v1333_v46 }
 0x35b   :  { %1812 = vmatprep.mubr.bf16.mxu0 %v1334_v3 }
 0x362   :  { %1813 = vmatmul.mubr.bf16.gmra.mxu0 %v1335_v61 }
 0x363   :  { %1816 = vmatprep.mubr.bf16.mxu0 %v1336_v47 }
 0x36a   :  { %1817 = vmatmul.mubr.bf16.gmra.mxu0 %v1337_v10 }
 0x3f2   :  { %v1790_v42 = vpop.f32.mrf.mxu0 }
 0x3f3   :  { %v1435_v63 = vadd.f32 %v1790_v42, %v3061_v0 }
 0x3f4   :  { %v1426_v48 = vpop.f32.mrf.mxu0 }
 0x3f5   :  { %1555 = vst [vmem:[%s3204_s13 + $0x10] sm:$0xff] %v1435_v63  ;;  %v1427_v55 = vadd.f32 %v3061_v0, %v1426_v48 }
 0x3f6   :  { %v1791_v36 = vpop.f32.mrf.mxu0 }
 0x3f7   :  { %1553 = vst [vmem:[%s3204_s13] sm:$0xff] %v1427_v55  ;;  %v1438_v56 = vadd.f32 %v1791_v36, %v3061_v0 }
 0x3f8   :  { %v1429_v28 = vpop.f32.mrf.mxu0 }
 0x3f9   :  { %1556 = vst [vmem:[%s3204_s13 + $0x18] sm:$0xff] %v1438_v56  ;;  %v1430_v5 = vadd.f32 %v3061_v0, %v1429_v28 }
 0x3fa   :  { %v1794_v11 = vpop.f32.mrf.mxu0 }
 0x3fb   :  { %1554 = vst [vmem:[%s3204_s13 + $0x8] sm:$0xff] %v1430_v5  ;;  %v1451_v18 = vadd.f32 %v1794_v11, %v3061_v0 }
 0x3fc   :  { %v1442_v52 = vpop.f32.mrf.mxu0 }
 0x3fd   :  { %1559 = vst [vmem:[%s3204_s13 + $0x30] sm:$0xff] %v1451_v18  ;;  %v1443_v53 = vadd.f32 %v3061_v0, %v1442_v52 }
 0x3fe   :  { %v1795_v57 = vpop.f32.mrf.mxu0 }
 0x3ff   :  { %1557 = vst [vmem:[%s3204_s13 + $0x20] sm:$0xff] %v1443_v53  ;;  %v1454_v8 = vadd.f32 %v1795_v57, %v3061_v0 }
 0x400   :  { %v1445_v20 = vpop.f32.mrf.mxu0 }
 0x401   :  { %1560 = vst [vmem:[%s3204_s13 + $0x38] sm:$0xff] %v1454_v8  ;;  %v1446_v47 = vadd.f32 %v3061_v0, %v1445_v20 }
 0x402   :  { %v1798_v38 = vpop.f32.mrf.mxu0 }
 0x403   :  { %1558 = vst [vmem:[%s3204_s13 + $0x28] sm:$0xff] %v1446_v47  ;;  %v1467_v10 = vadd.f32 %v1798_v38, %v3061_v0 }
 0x404   :  { %v1458_v12 = vpop.f32.mrf.mxu0 }
 0x405   :  { %1563 = vst [vmem:[%s3204_s13 + $0x50] sm:$0xff] %v1467_v10  ;;  %v1459_v50 = vadd.f32 %v3061_v0, %v1458_v12 }
 0x406   :  { %v1799_v19 = vpop.f32.mrf.mxu0 }
 0x407   :  { %1561 = vst [vmem:[%s3204_s13 + $0x40] sm:$0xff] %v1459_v50  ;;  %v1470_v54 = vadd.f32 %v1799_v19, %v3061_v0 }
 0x408   :  { %v1461_v14 = vpop.f32.mrf.mxu0 }
 0x409   :  { %1564 = vst [vmem:[%s3204_s13 + $0x58] sm:$0xff] %v1470_v54  ;;  %v1462_v17 = vadd.f32 %v3061_v0, %v1461_v14 }
 0x40a   :  { %v1802_v24 = vpop.f32.mrf.mxu0 }
 0x40b   :  { %1562 = vst [vmem:[%s3204_s13 + $0x48] sm:$0xff] %v1462_v17  ;;  %v1483_v33 = vadd.f32 %v1802_v24, %v3061_v0 }
 0x40c   :  { %v1474_v45 = vpop.f32.mrf.mxu0 }
 0x40d   :  { %1567 = vst [vmem:[%s3204_s13 + $0x70] sm:$0xff] %v1483_v33  ;;  %v1475_v34 = vadd.f32 %v3061_v0, %v1474_v45 }
 0x40e   :  { %v1803_v2 = vpop.f32.mrf.mxu0 }
 0x40f   :  { %1565 = vst [vmem:[%s3204_s13 + $0x60] sm:$0xff] %v1475_v34  ;;  %v1486_v16 = vadd.f32 %v1803_v2, %v3061_v0 }
 0x410   :  { %v1477_v29 = vpop.f32.mrf.mxu0 }
 0x411   :  { %1568 = vst [vmem:[%s3204_s13 + $0x78] sm:$0xff] %v1486_v16  ;;  %v1478_v6 = vadd.f32 %v3061_v0, %v1477_v29 }
 0x412   :  { %v1806_v37 = vpop.f32.mrf.mxu0 }
 0x413   :  { %1566 = vst [vmem:[%s3204_s13 + $0x68] sm:$0xff] %v1478_v6  ;;  %v1499_v62 = vadd.f32 %v1806_v37, %v3061_v0 }
 0x414   :  { %v1490_v41 = vpop.f32.mrf.mxu0 }
 0x415   :  { %1571 = vst [vmem:[%s3204_s13 + $0x90] sm:$0xff] %v1499_v62  ;;  %v1491_v25 = vadd.f32 %v3061_v0, %v1490_v41 }
 0x416   :  { %v1807_v21 = vpop.f32.mrf.mxu0 }
 0x417   :  { %1569 = vst [vmem:[%s3204_s13 + $0x80] sm:$0xff] %v1491_v25  ;;  %v1502_v13 = vadd.f32 %v1807_v21, %v3061_v0 }
 0x418   :  { %v1493_v60 = vpop.f32.mrf.mxu0 }
 0x419   :  { %1572 = vst [vmem:[%s3204_s13 + $0x98] sm:$0xff] %v1502_v13  ;;  %v1494_v32 = vadd.f32 %v3061_v0, %v1493_v60 }
 0x41a   :  { %v1810_v51 = vpop.f32.mrf.mxu0 }
 0x41b   :  { %1570 = vst [vmem:[%s3204_s13 + $0x88] sm:$0xff] %v1494_v32  ;;  %v1515_v30 = vadd.f32 %v1810_v51, %v3061_v0 }
 0x41c   :  { %v1506_v15 = vpop.f32.mrf.mxu0 }
 0x41d   :  { %1575 = vst [vmem:[%s3204_s13 + $0xb0] sm:$0xff] %v1515_v30  ;;  %v1507_v43 = vadd.f32 %v3061_v0, %v1506_v15 }
 0x41e   :  { %v1811_v58 = vpop.f32.mrf.mxu0 }
 0x41f   :  { %1573 = vst [vmem:[%s3204_s13 + $0xa0] sm:$0xff] %v1507_v43  ;;  %v1518_v49 = vadd.f32 %v1811_v58, %v3061_v0 }
 0x420   :  { %v1509_v4 = vpop.f32.mrf.mxu0 }
 0x421   :  { %1576 = vst [vmem:[%s3204_s13 + $0xb8] sm:$0xff] %v1518_v49  ;;  %v1510_v23 = vadd.f32 %v3061_v0, %v1509_v4 }
 0x422   :  { %v1814_v22 = vpop.f32.mrf.mxu0 }
 0x423   :  { %1574 = vst [vmem:[%s3204_s13 + $0xa8] sm:$0xff] %v1510_v23  ;;  %v1531_v31 = vadd.f32 %v1814_v22, %v3061_v0 }
 0x424   :  { %v1522_v40 = vpop.f32.mrf.mxu0 }
 0x425   :  { %1579 = vst [vmem:[%s3204_s13 + $0xd0] sm:$0xff] %v1531_v31  ;;  %v1523_v44 = vadd.f32 %v3061_v0, %v1522_v40 }
 0x426   :  { %v1815_v27 = vpop.f32.mrf.mxu0 }
 0x427   :  { %1577 = vst [vmem:[%s3204_s13 + $0xc0] sm:$0xff] %v1523_v44  ;;  %v1534_v1 = vadd.f32 %v1815_v27, %v3061_v0 }
 0x428   :  { %v1525_v7 = vpop.f32.mrf.mxu0 }
 0x429   :  { %1580 = vst [vmem:[%s3204_s13 + $0xd8] sm:$0xff] %v1534_v1  ;;  %v1526_v39 = vadd.f32 %v3061_v0, %v1525_v7 }
 0x42a   :  { %v1818_v46 = vpop.f32.mrf.mxu0 }
 0x42b   :  { %1578 = vst [vmem:[%s3204_s13 + $0xc8] sm:$0xff] %v1526_v39  ;;  %v1547_v3 = vadd.f32 %v1818_v46, %v3061_v0 }
 0x42c   :  { %v1538_v35 = vpop.f32.mrf.mxu0 }
 0x42d   :  { %1583 = vst [vmem:[%s3204_s13 + $0xf0] sm:$0xff] %v1547_v3  ;;  %v1539_v9 = vadd.f32 %v3061_v0, %v1538_v35 }
 0x42e   :  { %v1819_v26 = vpop.f32.mrf.mxu0 }
 0x42f   :  { %1581 = vst [vmem:[%s3204_s13 + $0xe0] sm:$0xff] %v1539_v9  ;;  %v1550_v59 = vadd.f32 %v1819_v26, %v3061_v0 }
 0x430   :  { %v1541_v61 = vpop.f32.mrf.mxu0 }
 0x431   :  { %1584 = vst [vmem:[%s3204_s13 + $0xf8] sm:$0xff] %v1550_v59  ;;  %v1542_v42 = vadd.f32 %v3061_v0, %v1541_v61 }
 0x433   :  { %1582 = vst [vmem:[%s3204_s13 + $0xe8] sm:$0xff] %v1542_v42 }

</bundles_post_ra>
